<compile_context>
chip_gen: v7x
topology: tpu7x:2x2x1
jax: 0.10.0
libtpu: 0.0.40
codegen_flags: <defaults>
</compile_context>

<pallas_src>
import math

import jax
import jax.numpy as jnp
from jax.experimental import pallas as pl
from jax.experimental.pallas import tpu as pltpu

# ---------------- hyper-parameters (small, consistent with __init__) --------
DIM = 32                     # self.dim
NUM_LAYER = 2                # self.num_layer
NUM_REL_BASE = 4             # num_relation argument
NUM_RELATION = NUM_REL_BASE * 2
NUM_NODE = 16                # self.num_node
NUM_HEAD = 1                 # num_head
HEAD_DIM = DIM // NUM_HEAD
HISTORY_LEN = 3              # length of history_list used in the example
TOPK = 4                     # self.gen_edge_topk
NQ = 4                       # number of query triples
E_G = 24                     # edges per history graph
E_DIS = E_G + NUM_NODE       # padded edge count for disentangle (last_g + self loops)


# ---------------- small in-kernel helpers ------------------------------------
def _dot(a, b):
    return jnp.dot(a, b, preferred_element_type=jnp.float32)


def _dot_nt(a, b):
    # a @ b.T expressed as dot_general (MXU handles the transposed operand).
    return jax.lax.dot_general(a, b, (((1,), (1,)), ((), ())),
                               preferred_element_type=jnp.float32)


# ---------------- Pallas kernels ---------------------------------------------
def _history_kernel(node_mp_ref, temb_ref, srcoh_ref, dstoh_ref, maskne_ref,
                    cinv_ref,
                    nodeemb_ref, gatew_ref, w1a_ref, w1b_ref, w2_ref,
                    wc_ref, wl_ref, wt_ref, dynw_ref, gwx_ref, gwh_ref,
                    bias_ref, headoh_ref, er_ref,
                    hist_out_ref, tsta_out_ref, score_out_ref,
                    hist_s, tsta_s, tdyn_s):
    D = DIM
    N = NUM_NODE
    t = pl.program_id(0)

    @pl.when(t == 0)
    def _init():
        hist_s[...] = nodeemb_ref[...]
        tsta_s[...] = jnp.zeros_like(tsta_s)
        tdyn_s[...] = jnp.zeros_like(tdyn_s)

    hist = hist_s[...]                 # hist_embly_list[-1] (previous step)
    tsta = tsta_s[...]
    tdyn = tdyn_s[...]
    node_emb = nodeemb_ref[...]
    bias = bias_ref[...]               # [8, 96] packed bias slab

    # -------- evo_module prologue (gate + stainit MLP) ------------------------
    # TODO(synk): layers.TemporalConv is not in the reference source -> the
    # NUM_LAYER message-passing layers are passthrough (short_cut=False anyway).
    gate = jax.nn.sigmoid(_dot(tsta, gatew_ref[...]) + bias[0:1, 0:D])
    init_ent = gate * hist + (1.0 - gate) * node_emb
    h1 = jnp.maximum(_dot(init_ent, w1a_ref[...])
                     + _dot(node_mp_ref[...], w1b_ref[...])
                     + bias[1:2, 0:2 * D], 0.0)
    curr = _dot(h1, w2_ref[...]) + bias[2:3, 0:D]          # evo_state[-1], [N, D]

    # -------- disentangleFeat --------------------------------------------------
    curr_dst = _dot(dstoh_ref[...], curr)                  # curr_stat[dst], [E, D]
    last_src = _dot(srcoh_ref[...], hist)                  # last_stat[src], [E, D]
    # packed q|k|v projection -> one [E, 96] lane-dense result
    qkv = (_dot(curr_dst, wc_ref[...]) + _dot(last_src, wl_ref[...])
           + _dot(temb_ref[...], wt_ref[...]) + bias[3:4, :])
    q = qkv[:, 0:D]
    k = qkv[:, D:2 * D]
    v = qkv[:, 2 * D:3 * D]
    qk = q * k
    # attention logits directly in a lane-dense [1, E] row (no column transpose)
    attn_all = _dot_nt(jnp.ones((8, D), jnp.float32), qk)  # rows identical
    attn = attn_all[0:1, :] * (1.0 / math.sqrt(HEAD_DIM))  # [1, E]

    # segment softmax in [N, E] layout: masked lane max / sum per destination
    on = maskne_ref[...] > 0.5                             # [N, E]
    neg = jnp.float32(-1e30)
    m_dyn = jnp.where(on, attn, neg)
    m_sta = jnp.where(on, -attn, neg)
    mx_d = jnp.max(m_dyn, axis=-1, keepdims=True)
    mx_s = jnp.max(m_sta, axis=-1, keepdims=True)
    ex_d = jnp.where(on, jnp.exp(m_dyn - mx_d), 0.0)
    ex_s = jnp.where(on, jnp.exp(m_sta - mx_s), 0.0)
    den_d = jnp.maximum(jnp.sum(ex_d, axis=-1, keepdims=True), 1e-30)
    den_s = jnp.maximum(jnp.sum(ex_s, axis=-1, keepdims=True), 1e-30)

    # stack the +attn / -attn branches along sublanes -> single MXU contraction
    pv = _dot(jnp.concatenate([ex_d, ex_s], axis=0), v)    # [2N, D]
    cinv = cinv_ref[...]                                   # [N, 1] = 1/in-degree
    # softmax normalisation then scatter-mean (matches scatter(prob*v, 'mean'))
    feat_dyn = pv[0:N, :] * (cinv * pl.reciprocal(den_d, approx=True))
    feat_sta = pv[N:2 * N, :] * (cinv * pl.reciprocal(den_s, approx=True))
    feat_dyn = _dot(feat_dyn, dynw_ref[...])               # feat_dyn @ dyn_weight

    # -------- GRUCell(feat_dyn, tempo_feat_dyn), packed r|z|n gates ------------
    gi = _dot(feat_dyn, gwx_ref[...]) + bias[4:5, :]
    gh = _dot(tdyn, gwh_ref[...]) + bias[5:6, :]
    r = jax.nn.sigmoid(gi[:, 0:D] + gh[:, 0:D])
    z = jax.nn.sigmoid(gi[:, D:2 * D] + gh[:, D:2 * D])
    n = jnp.tanh(gi[:, 2 * D:3 * D] + r * gh[:, 2 * D:3 * D])
    tdyn_new = (1.0 - z) * n + z * tdyn

    # -------- carry state in VMEM ----------------------------------------------
    hist_s[...] = curr
    tsta_s[...] = feat_sta
    tdyn_s[...] = tdyn_new

    # -------- outputs (constant block index -> last step's values reach HBM) ---
    hist_out_ref[...] = curr
    tsta_out_ref[...] = feat_sta
    # TODO(synk): decoder.ConvTransE is not in the reference source; DistMult-
    # style bilinear scoring used as a surrogate.
    eh = _dot(headoh_ref[...], curr)                       # [Q, D]
    score_out_ref[...] = _dot_nt(eh * er_ref[...], curr)   # [Q, N]


def _virtual_kernel(node_mp_ref, hist_ref, tsta_ref, nodeemb_ref,
                    gatew_ref, w1a_ref, w1b_ref, w2_ref, bias_ref,
                    headoh_ref, er_ref, score_ref):
    D = DIM
    bias = bias_ref[...]
    gate = jax.nn.sigmoid(_dot(tsta_ref[...], gatew_ref[...]) + bias[0:1, 0:D])
    init_ent = gate * hist_ref[...] + (1.0 - gate) * nodeemb_ref[...]
    h1 = jnp.maximum(_dot(init_ent, w1a_ref[...])
                     + _dot(node_mp_ref[...], w1b_ref[...])
                     + bias[1:2, 0:2 * D], 0.0)
    curr = _dot(h1, w2_ref[...]) + bias[2:3, 0:D]
    eh = _dot(headoh_ref[...], curr)
    score_ref[...] = _dot_nt(eh * er_ref[...], curr)


# ---------------- pallas_call wrappers ----------------------------------------
def _run_history(node_mp, type_emb, src_oh, dst_oh, mask_ne, cinv,
                 nodeemb, gate_w, w1a, w1b, w2, wc, wl, wt, dyn_w, gwx, gwh,
                 bias, head_oh, er):
    step_in = [node_mp, type_emb, src_oh, dst_oh, mask_ne, cinv]
    const_in = [nodeemb, gate_w, w1a, w1b, w2, wc, wl, wt, dyn_w, gwx, gwh,
                bias, head_oh, er]

    def step_spec(x):
        tail = tuple(x.shape[1:])
        return pl.BlockSpec((None,) + tail,
                            lambda t, _n=len(tail): (t,) + (0,) * _n)

    def const_spec(x):
        return pl.BlockSpec(tuple(x.shape),
                            lambda t, _n=x.ndim: (0,) * _n)

    out_shapes = (jax.ShapeDtypeStruct((NUM_NODE, DIM), jnp.float32),
                  jax.ShapeDtypeStruct((NUM_NODE, DIM), jnp.float32),
                  jax.ShapeDtypeStruct((NQ, NUM_NODE), jnp.float32))
    out_specs = (pl.BlockSpec((NUM_NODE, DIM), lambda t: (0, 0)),
                 pl.BlockSpec((NUM_NODE, DIM), lambda t: (0, 0)),
                 pl.BlockSpec((NQ, NUM_NODE), lambda t: (0, 0)))

    return pl.pallas_call(
        _history_kernel,
        grid=(HISTORY_LEN,),
        in_specs=[step_spec(x) for x in step_in] + [const_spec(x) for x in const_in],
        out_specs=out_specs,
        out_shape=out_shapes,
        scratch_shapes=[pltpu.VMEM((NUM_NODE, DIM), jnp.float32)] * 3,
        compiler_params=pltpu.CompilerParams(dimension_semantics=("arbitrary",)),
    )(*(step_in + const_in))


def _run_virtual(node_mp_v, hist_fin, tsta_fin, nodeemb,
                 gate_w, w1a, w1b, w2, bias, head_oh, er):
    ins = [node_mp_v, hist_fin, tsta_fin, nodeemb, gate_w, w1a, w1b, w2,
           bias, head_oh, er]

    def spec(x):
        return pl.BlockSpec(tuple(x.shape), lambda i, _n=x.ndim: (0,) * _n)

    return pl.pallas_call(
        _virtual_kernel,
        grid=(1,),
        in_specs=[spec(x) for x in ins],
        out_specs=pl.BlockSpec((NQ, NUM_NODE), lambda i: (0, 0)),
        out_shape=jax.ShapeDtypeStruct((NQ, NUM_NODE), jnp.float32),
        compiler_params=pltpu.CompilerParams(dimension_semantics=("arbitrary",)),
    )(*ins)


# ---------------- parameter init (with lane-dense packing) --------------------
def init_params(key):
    def w(shape, scale=0.1):
        nonlocal key
        key, sub = jax.random.split(key)
        return (scale * jax.random.normal(sub, shape)).astype(jnp.float32)

    D = DIM
    Z = jnp.zeros((D, D), jnp.float32)

    q_wa, q_wb, q_b = w((D, D)), w((D, D)), w((1, D))
    k_wa, k_wb, k_b = w((D, D)), w((D, D)), w((1, D))
    v_w, v_b = w((D, D)), w((1, D))
    gru = {g: (w((D, D)), w((1, D))) for g in ('ir', 'iz', 'in', 'hr', 'hz', 'hn')}
    gate_b, sta_b1, sta_b2 = w((1, D)), w((1, 2 * D)), w((1, D))

    def pad96(b):
        return jnp.pad(b, ((0, 0), (0, 96 - b.shape[1])))

    p = {
        'relemb': w((NUM_RELATION, D)),
        'nodeemb': w((NUM_NODE, D)),
        'selfrel': w((1, D)),
        'gate_w': w((D, D)),
        # stainit: Linear(2D,2D)+ReLU+Linear(2D,D); first weight split for concat
        'sta_w1a': w((D, 2 * D)),
        'sta_w1b': w((D, 2 * D)),
        'sta_w2': w((2 * D, D)),
        'dyn_weight': w((D, D)),
        # packed q|k|v projections (inputs: curr_dst, last_src, type_emb)
        'qkv_wc': jnp.concatenate([q_wa, Z, Z], axis=1),     # [D, 3D]
        'qkv_wl': jnp.concatenate([Z, k_wa, v_w], axis=1),   # [D, 3D]
        'qkv_wt': jnp.concatenate([q_wb, k_wb, Z], axis=1),  # [D, 3D]
        # packed GRU weights (r|z|n)
        'gru_wx': jnp.concatenate([gru['ir'][0], gru['iz'][0], gru['in'][0]], axis=1),
        'gru_wh': jnp.concatenate([gru['hr'][0], gru['hz'][0], gru['hn'][0]], axis=1),
    }
    bias_rows = [
        pad96(gate_b),                                                 # row 0
        pad96(sta_b1),                                                 # row 1
        pad96(sta_b2),                                                 # row 2
        jnp.concatenate([q_b, k_b, v_b], axis=1),                      # row 3
        jnp.concatenate([gru['ir'][1], gru['iz'][1], gru['in'][1]], axis=1),  # row 4
        jnp.concatenate([gru['hr'][1], gru['hz'][1], gru['hn'][1]], axis=1),  # row 5
        jnp.zeros((2, 96), jnp.float32),                               # pad rows
    ]
    p['bias_slab'] = jnp.concatenate(bias_rows, axis=0)                # [8, 96]
    return p


# ---------------- forward (single jit region) ---------------------------------
def dimnet_forward(p, hist_src, hist_dst, hist_type, query_triple):
    """hist_*: [T, E_G] int32 stacked history graphs.
    query_triple: [Q, 3] int32 in (head, tail, relation) order."""
    N, D, T, E = NUM_NODE, DIM, HISTORY_LEN, E_G
    node_ids = jnp.arange(N, dtype=jnp.int32)
    relemb, nodeemb, selfrel = p['relemb'], p['nodeemb'], p['selfrel']

    # TODO(synk): layers.rgraphConv (gen_graph + forward) is not in the reference
    # source; relation embeddings are used directly.
    def scatter_mean_mat(dst, valid):
        oh = (dst[None, :] == node_ids[:, None]).astype(jnp.float32) * valid[None, :]
        cnt = jnp.maximum(jnp.sum(oh, axis=1, keepdims=True), 1.0)
        return oh / cnt                                                # [N, E']

    node_mp_l, temb_l, srcoh_l, dstoh_l, maskne_l, cinv_l = [], [], [], [], [], []
    for t in range(T):
        # evo_module: scatter-mean of rel_emb[edge_type] onto current dst nodes
        node_mp_l.append(scatter_mean_mat(hist_dst[t], jnp.ones((E,), jnp.float32))
                         @ relemb[hist_type[t]])
        # disentangle uses last_g (t-1) padded to a static E_DIS edge count
        if t == 0:
            psrc = jnp.zeros((E,), jnp.int32)
            pdst = jnp.zeros((E,), jnp.int32)
            ptemb = jnp.zeros((E, D), jnp.float32)
            pvalid = jnp.zeros((E,), jnp.float32)
        else:
            psrc, pdst = hist_src[t - 1], hist_dst[t - 1]
            ptemb = relemb[hist_type[t - 1]]
            pvalid = jnp.ones((E,), jnp.float32)
        esrc = jnp.concatenate([psrc, node_ids])
        edst = jnp.concatenate([pdst, node_ids])
        valid = jnp.concatenate([pvalid, jnp.ones((N,), jnp.float32)])
        temb = jnp.concatenate([ptemb, jnp.broadcast_to(selfrel, (N, D))], axis=0)
        src_oh = (esrc[:, None] == node_ids[None, :]).astype(jnp.float32) * valid[:, None]
        dst_oh = (edst[:, None] == node_ids[None, :]).astype(jnp.float32) * valid[:, None]
        mask_ne = dst_oh.T                                             # [N, E_DIS]
        cinv = 1.0 / jnp.maximum(jnp.sum(mask_ne, axis=1, keepdims=True), 1.0)
        temb_l.append(temb); srcoh_l.append(src_oh); dstoh_l.append(dst_oh)
        maskne_l.append(mask_ne); cinv_l.append(cinv)

    node_mp = jnp.stack(node_mp_l)     # [T, N, D]
    type_emb = jnp.stack(temb_l)       # [T, E_DIS, D]
    src_oh = jnp.stack(srcoh_l)        # [T, E_DIS, N]
    dst_oh = jnp.stack(dstoh_l)        # [T, E_DIS, N]
    mask_ne = jnp.stack(maskne_l)      # [T, N, E_DIS]
    cinv = jnp.stack(cinv_l)           # [T, N, 1]

    # decoder query gathers (query_triple[:, [0, 2, 1]] -> head, relation)
    head_oh = (query_triple[:, 0][:, None] == node_ids[None, :]).astype(jnp.float32)
    er = relemb[query_triple[:, 2]]

    hist_fin, tsta_fin, score1 = _run_history(
        node_mp, type_emb, src_oh, dst_oh, mask_ne, cinv,
        nodeemb, p['gate_w'], p['sta_w1a'], p['sta_w1b'], p['sta_w2'],
        p['qkv_wc'], p['qkv_wl'], p['qkv_wt'], p['dyn_weight'],
        p['gru_wx'], p['gru_wh'], p['bias_slab'], head_oh, er)

    # virtual graph: top-k tails per query, rel_emb scatter-mean onto those tails
    _, topk_ind = jax.lax.top_k(score1, TOPK)
    v_dst = topk_ind.reshape(-1).astype(jnp.int32)
    v_rel = jnp.repeat(query_triple[:, 2], TOPK)
    node_mp_v = scatter_mean_mat(v_dst, jnp.ones((NQ * TOPK,), jnp.float32)) @ relemb[v_rel]

    score2 = _run_virtual(node_mp_v, hist_fin, tsta_fin, nodeemb,
                          p['gate_w'], p['sta_w1a'], p['sta_w1b'], p['sta_w2'],
                          p['bias_slab'], head_oh, er)
    cl_loss = jnp.float32(0.0)          # eval path: contrastive term is training-only
    return score2, cl_loss


# ---------------- main ---------------------------------------------------------
if __name__ == "__main__":
    key = jax.random.PRNGKey(0)
    key, pkey = jax.random.split(key)
    params = init_params(pkey)

    srcs, dsts, types = [], [], []
    for _ in range(HISTORY_LEN):
        key, k1, k2, k3 = jax.random.split(key, 4)
        srcs.append(jax.random.randint(k1, (E_G,), 0, NUM_NODE, dtype=jnp.int32))
        dsts.append(jax.random.randint(k2, (E_G,), 0, NUM_NODE, dtype=jnp.int32))
        types.append(jax.random.randint(k3, (E_G,), 0, NUM_RELATION, dtype=jnp.int32))
    hist_src = jnp.stack(srcs)
    hist_dst = jnp.stack(dsts)
    hist_type = jnp.stack(types)

    key, kh, kt, kr = jax.random.split(key, 4)
    q_h = jax.random.randint(kh, (NQ, 1), 0, NUM_NODE, dtype=jnp.int32)
    q_t = jax.random.randint(kt, (NQ, 1), 0, NUM_NODE, dtype=jnp.int32)
    q_r = jax.random.randint(kr, (NQ, 1), 0, NUM_RELATION, dtype=jnp.int32)
    query_triple = jnp.concatenate([q_h, q_t, q_r], axis=1)    # (h, t, r)

    fwd = jax.jit(dimnet_forward)
    score, cl_loss = fwd(params, hist_src, hist_dst, hist_type, query_triple)
    jax.block_until_ready(score)
    jax.block_until_ready(cl_loss)
    assert score.shape == (NQ, NUM_NODE)
    print("KERNEL_OK")
</pallas_src>

<mosaic_0001>
module attributes {stable_mosaic.version = 11 : i64} {
  func.func @_history_kernel(%arg0: i32, %arg1: memref<1x16x32xf32, #tpu.memory_space<vmem>>, %arg2: memref<1x40x32xf32, #tpu.memory_space<vmem>>, %arg3: memref<1x40x16xf32, #tpu.memory_space<vmem>>, %arg4: memref<1x40x16xf32, #tpu.memory_space<vmem>>, %arg5: memref<1x16x40xf32, #tpu.memory_space<vmem>>, %arg6: memref<1x16x1xf32, #tpu.memory_space<vmem>>, %arg7: memref<16x32xf32, #tpu.memory_space<vmem>>, %arg8: memref<32x32xf32, #tpu.memory_space<vmem>>, %arg9: memref<32x64xf32, #tpu.memory_space<vmem>>, %arg10: memref<32x64xf32, #tpu.memory_space<vmem>>, %arg11: memref<64x32xf32, #tpu.memory_space<vmem>>, %arg12: memref<32x96xf32, #tpu.memory_space<vmem>>, %arg13: memref<32x96xf32, #tpu.memory_space<vmem>>, %arg14: memref<32x96xf32, #tpu.memory_space<vmem>>, %arg15: memref<32x32xf32, #tpu.memory_space<vmem>>, %arg16: memref<32x96xf32, #tpu.memory_space<vmem>>, %arg17: memref<32x96xf32, #tpu.memory_space<vmem>>, %arg18: memref<8x96xf32, #tpu.memory_space<vmem>>, %arg19: memref<4x16xf32, #tpu.memory_space<vmem>>, %arg20: memref<4x32xf32, #tpu.memory_space<vmem>>, %arg21: memref<16x32xf32, #tpu.memory_space<vmem>>, %arg22: memref<16x32xf32, #tpu.memory_space<vmem>>, %arg23: memref<4x16xf32, #tpu.memory_space<vmem>>, %arg24: memref<16x32xf32, #tpu.memory_space<vmem>>, %arg25: memref<16x32xf32, #tpu.memory_space<vmem>>, %arg26: memref<16x32xf32, #tpu.memory_space<vmem>>) attributes {dimension_semantics = [#tpu.dimension_semantics<arbitrary>], iteration_bounds = array<i64: 3>, scalar_prefetch = 0 : i64, scratch_operands = 3 : i64, tpu.core_type = #tpu.core_type<tc>, window_params = [{transform_indices = @transform_0, window_bounds = array<i64: 1, 16, 32>}, {transform_indices = @transform_1, window_bounds = array<i64: 1, 40, 32>}, {transform_indices = @transform_2, window_bounds = array<i64: 1, 40, 16>}, {transform_indices = @transform_3, window_bounds = array<i64: 1, 40, 16>}, {transform_indices = @transform_4, window_bounds = array<i64: 1, 16, 40>}, {transform_indices = @transform_5, window_bounds = array<i64: 1, 16, 1>}, {pipeline_mode = #tpu.pipeline_mode<synchronous>, transform_indices = @transform_6, window_bounds = array<i64: 16, 32>}, {pipeline_mode = #tpu.pipeline_mode<synchronous>, transform_indices = @transform_7, window_bounds = array<i64: 32, 32>}, {pipeline_mode = #tpu.pipeline_mode<synchronous>, transform_indices = @transform_8, window_bounds = array<i64: 32, 64>}, {pipeline_mode = #tpu.pipeline_mode<synchronous>, transform_indices = @transform_9, window_bounds = array<i64: 32, 64>}, {pipeline_mode = #tpu.pipeline_mode<synchronous>, transform_indices = @transform_10, window_bounds = array<i64: 64, 32>}, {pipeline_mode = #tpu.pipeline_mode<synchronous>, transform_indices = @transform_11, window_bounds = array<i64: 32, 96>}, {pipeline_mode = #tpu.pipeline_mode<synchronous>, transform_indices = @transform_12, window_bounds = array<i64: 32, 96>}, {pipeline_mode = #tpu.pipeline_mode<synchronous>, transform_indices = @transform_13, window_bounds = array<i64: 32, 96>}, {pipeline_mode = #tpu.pipeline_mode<synchronous>, transform_indices = @transform_14, window_bounds = array<i64: 32, 32>}, {pipeline_mode = #tpu.pipeline_mode<synchronous>, transform_indices = @transform_15, window_bounds = array<i64: 32, 96>}, {pipeline_mode = #tpu.pipeline_mode<synchronous>, transform_indices = @transform_16, window_bounds = array<i64: 32, 96>}, {pipeline_mode = #tpu.pipeline_mode<synchronous>, transform_indices = @transform_17, window_bounds = array<i64: 8, 96>}, {pipeline_mode = #tpu.pipeline_mode<synchronous>, transform_indices = @transform_18, window_bounds = array<i64: 4, 16>}, {pipeline_mode = #tpu.pipeline_mode<synchronous>, transform_indices = @transform_19, window_bounds = array<i64: 4, 32>}, {pipeline_mode = #tpu.pipeline_mode<synchronous>, transform_indices = @transform_20, window_bounds = array<i64: 16, 32>}, {pipeline_mode = #tpu.pipeline_mode<synchronous>, transform_indices = @transform_21, window_bounds = array<i64: 16, 32>}, {pipeline_mode = #tpu.pipeline_mode<synchronous>, transform_indices = @transform_22, window_bounds = array<i64: 4, 16>}]} {
    %c0_i32 = arith.constant 0 : i32
    %0 = arith.cmpi eq, %arg0, %c0_i32 : i32
    %1 = arith.extui %0 : i1 to i32
    %c0_i32_0 = arith.constant 0 : i32
    %2 = arith.cmpi ne, %1, %c0_i32_0 : i32
    scf.if %2 {
      %c0_99 = arith.constant 0 : index
      %c0_100 = arith.constant 0 : index
      %167 = vector.load %arg7[%c0_99, %c0_100] : memref<16x32xf32, #tpu.memory_space<vmem>>, vector<16x32xf32>
      %c0_101 = arith.constant 0 : index
      %c0_102 = arith.constant 0 : index
      %168 = vector.load %arg24[%c0_101, %c0_102] : memref<16x32xf32, #tpu.memory_space<vmem>>, vector<16x32xf32>
      tpu.vector_store %arg24[%c0_101, %c0_102], %167 {strides = array<i32>} : memref<16x32xf32, #tpu.memory_space<vmem>>, vector<16x32xf32>,
      %cst_103 = arith.constant 0.000000e+00 : f32
      %169 = vector.broadcast %cst_103 : f32 to vector<16x32xf32>
      %c0_104 = arith.constant 0 : index
      %c0_105 = arith.constant 0 : index
      %170 = vector.load %arg25[%c0_104, %c0_105] : memref<16x32xf32, #tpu.memory_space<vmem>>, vector<16x32xf32>
      tpu.vector_store %arg25[%c0_104, %c0_105], %169 {strides = array<i32>} : memref<16x32xf32, #tpu.memory_space<vmem>>, vector<16x32xf32>,
      %cst_106 = arith.constant 0.000000e+00 : f32
      %171 = vector.broadcast %cst_106 : f32 to vector<16x32xf32>
      %c0_107 = arith.constant 0 : index
      %c0_108 = arith.constant 0 : index
      %172 = vector.load %arg26[%c0_107, %c0_108] : memref<16x32xf32, #tpu.memory_space<vmem>>, vector<16x32xf32>
      tpu.vector_store %arg26[%c0_107, %c0_108], %171 {strides = array<i32>} : memref<16x32xf32, #tpu.memory_space<vmem>>, vector<16x32xf32>,
    } else {
    }
    %c0 = arith.constant 0 : index
    %c0_1 = arith.constant 0 : index
    %3 = vector.load %arg24[%c0, %c0_1] : memref<16x32xf32, #tpu.memory_space<vmem>>, vector<16x32xf32>
    %c0_2 = arith.constant 0 : index
    %c0_3 = arith.constant 0 : index
    %4 = vector.load %arg25[%c0_2, %c0_3] : memref<16x32xf32, #tpu.memory_space<vmem>>, vector<16x32xf32>
    %c0_4 = arith.constant 0 : index
    %c0_5 = arith.constant 0 : index
    %5 = vector.load %arg26[%c0_4, %c0_5] : memref<16x32xf32, #tpu.memory_space<vmem>>, vector<16x32xf32>
    %c0_6 = arith.constant 0 : index
    %c0_7 = arith.constant 0 : index
    %6 = vector.load %arg7[%c0_6, %c0_7] : memref<16x32xf32, #tpu.memory_space<vmem>>, vector<16x32xf32>
    %c0_8 = arith.constant 0 : index
    %c0_9 = arith.constant 0 : index
    %7 = vector.load %arg18[%c0_8, %c0_9] : memref<8x96xf32, #tpu.memory_space<vmem>>, vector<8x96xf32>
    %c0_10 = arith.constant 0 : index
    %c0_11 = arith.constant 0 : index
    %8 = vector.load %arg8[%c0_10, %c0_11] : memref<32x32xf32, #tpu.memory_space<vmem>>, vector<32x32xf32>
    %cst = arith.constant dense<0.000000e+00> : vector<16x32xf32>
    %9 = tpu.matmul %4, %8, %cst {dimension_numbers = #tpu.dot_dimension_numbers<[1], [0], [0], [1], [0, 0, 1, 1], [], []>} : vector<16x32xf32>, vector<32x32xf32>, vector<16x32xf32> -> vector<16x32xf32>
    %10 = vector.extract_strided_slice %7 {offsets = [0, 0], sizes = [1, 32], strides = [1, 1]} : vector<8x96xf32> to vector<1x32xf32>
    %11 = vector.broadcast %10 : vector<1x32xf32> to vector<16x32xf32>
    %12 = arith.addf %9, %11 : vector<16x32xf32>
    %13 = arith.negf %12 : vector<16x32xf32>
    %14 = math.exp %13 : vector<16x32xf32>
    %cst_12 = arith.constant 1.000000e+00 : f32
    %15 = vector.broadcast %cst_12 : f32 to vector<16x32xf32>
    %16 = arith.addf %15, %14 : vector<16x32xf32>
    %17 = arith.divf %15, %16 : vector<16x32xf32>
    %18 = arith.mulf %17, %3 : vector<16x32xf32>
    %cst_13 = arith.constant 1.000000e+00 : f32
    %19 = vector.broadcast %cst_13 : f32 to vector<16x32xf32>
    %20 = arith.subf %19, %17 : vector<16x32xf32>
    %21 = arith.mulf %20, %6 : vector<16x32xf32>
    %22 = arith.addf %18, %21 : vector<16x32xf32>
    %c0_14 = arith.constant 0 : index
    %c0_15 = arith.constant 0 : index
    %23 = vector.load %arg9[%c0_14, %c0_15] : memref<32x64xf32, #tpu.memory_space<vmem>>, vector<32x64xf32>
    %cst_16 = arith.constant dense<0.000000e+00> : vector<16x64xf32>
    %24 = tpu.matmul %22, %23, %cst_16 {dimension_numbers = #tpu.dot_dimension_numbers<[1], [0], [0], [1], [0, 0, 1, 1], [], []>} : vector<16x32xf32>, vector<32x64xf32>, vector<16x64xf32> -> vector<16x64xf32>
    %c0_17 = arith.constant 0 : index
    %c0_18 = arith.constant 0 : index
    %c0_19 = arith.constant 0 : index
    %25 = vector.load %arg1[%c0_17, %c0_18, %c0_19] : memref<1x16x32xf32, #tpu.memory_space<vmem>>, vector<1x16x32xf32>
    %26 = vector.shape_cast %25 : vector<1x16x32xf32> to vector<16x32xf32>
    %c0_20 = arith.constant 0 : index
    %c0_21 = arith.constant 0 : index
    %27 = vector.load %arg10[%c0_20, %c0_21] : memref<32x64xf32, #tpu.memory_space<vmem>>, vector<32x64xf32>
    %cst_22 = arith.constant dense<0.000000e+00> : vector<16x64xf32>
    %28 = tpu.matmul %26, %27, %cst_22 {dimension_numbers = #tpu.dot_dimension_numbers<[1], [0], [0], [1], [0, 0, 1, 1], [], []>} : vector<16x32xf32>, vector<32x64xf32>, vector<16x64xf32> -> vector<16x64xf32>
    %29 = arith.addf %24, %28 : vector<16x64xf32>
    %30 = vector.extract_strided_slice %7 {offsets = [1, 0], sizes = [1, 64], strides = [1, 1]} : vector<8x96xf32> to vector<1x64xf32>
    %31 = vector.broadcast %30 : vector<1x64xf32> to vector<16x64xf32>
    %32 = arith.addf %29, %31 : vector<16x64xf32>
    %cst_23 = arith.constant 0.000000e+00 : f32
    %33 = vector.broadcast %cst_23 : f32 to vector<16x64xf32>
    %34 = arith.maximumf %32, %33 : vector<16x64xf32>
    %c0_24 = arith.constant 0 : index
    %c0_25 = arith.constant 0 : index
    %35 = vector.load %arg11[%c0_24, %c0_25] : memref<64x32xf32, #tpu.memory_space<vmem>>, vector<64x32xf32>
    %cst_26 = arith.constant dense<0.000000e+00> : vector<16x32xf32>
    %36 = tpu.matmul %34, %35, %cst_26 {dimension_numbers = #tpu.dot_dimension_numbers<[1], [0], [0], [1], [0, 0, 1, 1], [], []>} : vector<16x64xf32>, vector<64x32xf32>, vector<16x32xf32> -> vector<16x32xf32>
    %37 = vector.extract_strided_slice %7 {offsets = [2, 0], sizes = [1, 32], strides = [1, 1]} : vector<8x96xf32> to vector<1x32xf32>
    %38 = vector.broadcast %37 : vector<1x32xf32> to vector<16x32xf32>
    %39 = arith.addf %36, %38 : vector<16x32xf32>
    %c0_27 = arith.constant 0 : index
    %c0_28 = arith.constant 0 : index
    %c0_29 = arith.constant 0 : index
    %40 = vector.load %arg4[%c0_27, %c0_28, %c0_29] : memref<1x40x16xf32, #tpu.memory_space<vmem>>, vector<1x40x16xf32>
    %41 = vector.shape_cast %40 : vector<1x40x16xf32> to vector<40x16xf32>
    %cst_30 = arith.constant dense<0.000000e+00> : vector<40x32xf32>
    %42 = tpu.matmul %41, %39, %cst_30 {dimension_numbers = #tpu.dot_dimension_numbers<[1], [0], [0], [1], [0, 0, 1, 1], [], []>} : vector<40x16xf32>, vector<16x32xf32>, vector<40x32xf32> -> vector<40x32xf32>
    %c0_31 = arith.constant 0 : index
    %c0_32 = arith.constant 0 : index
    %c0_33 = arith.constant 0 : index
    %43 = vector.load %arg3[%c0_31, %c0_32, %c0_33] : memref<1x40x16xf32, #tpu.memory_space<vmem>>, vector<1x40x16xf32>
    %44 = vector.shape_cast %43 : vector<1x40x16xf32> to vector<40x16xf32>
    %cst_34 = arith.constant dense<0.000000e+00> : vector<40x32xf32>
    %45 = tpu.matmul %44, %3, %cst_34 {dimension_numbers = #tpu.dot_dimension_numbers<[1], [0], [0], [1], [0, 0, 1, 1], [], []>} : vector<40x16xf32>, vector<16x32xf32>, vector<40x32xf32> -> vector<40x32xf32>
    %c0_35 = arith.constant 0 : index
    %c0_36 = arith.constant 0 : index
    %46 = vector.load %arg12[%c0_35, %c0_36] : memref<32x96xf32, #tpu.memory_space<vmem>>, vector<32x96xf32>
    %cst_37 = arith.constant dense<0.000000e+00> : vector<40x96xf32>
    %47 = tpu.matmul %42, %46, %cst_37 {dimension_numbers = #tpu.dot_dimension_numbers<[1], [0], [0], [1], [0, 0, 1, 1], [], []>} : vector<40x32xf32>, vector<32x96xf32>, vector<40x96xf32> -> vector<40x96xf32>
    %c0_38 = arith.constant 0 : index
    %c0_39 = arith.constant 0 : index
    %48 = vector.load %arg13[%c0_38, %c0_39] : memref<32x96xf32, #tpu.memory_space<vmem>>, vector<32x96xf32>
    %cst_40 = arith.constant dense<0.000000e+00> : vector<40x96xf32>
    %49 = tpu.matmul %45, %48, %cst_40 {dimension_numbers = #tpu.dot_dimension_numbers<[1], [0], [0], [1], [0, 0, 1, 1], [], []>} : vector<40x32xf32>, vector<32x96xf32>, vector<40x96xf32> -> vector<40x96xf32>
    %50 = arith.addf %47, %49 : vector<40x96xf32>
    %c0_41 = arith.constant 0 : index
    %c0_42 = arith.constant 0 : index
    %c0_43 = arith.constant 0 : index
    %51 = vector.load %arg2[%c0_41, %c0_42, %c0_43] : memref<1x40x32xf32, #tpu.memory_space<vmem>>, vector<1x40x32xf32>
    %52 = vector.shape_cast %51 : vector<1x40x32xf32> to vector<40x32xf32>
    %c0_44 = arith.constant 0 : index
    %c0_45 = arith.constant 0 : index
    %53 = vector.load %arg14[%c0_44, %c0_45] : memref<32x96xf32, #tpu.memory_space<vmem>>, vector<32x96xf32>
    %cst_46 = arith.constant dense<0.000000e+00> : vector<40x96xf32>
    %54 = tpu.matmul %52, %53, %cst_46 {dimension_numbers = #tpu.dot_dimension_numbers<[1], [0], [0], [1], [0, 0, 1, 1], [], []>} : vector<40x32xf32>, vector<32x96xf32>, vector<40x96xf32> -> vector<40x96xf32>
    %55 = arith.addf %50, %54 : vector<40x96xf32>
    %56 = vector.extract_strided_slice %7 {offsets = [3, 0], sizes = [1, 96], strides = [1, 1]} : vector<8x96xf32> to vector<1x96xf32>
    %57 = vector.broadcast %56 : vector<1x96xf32> to vector<40x96xf32>
    %58 = arith.addf %55, %57 : vector<40x96xf32>
    %59 = vector.extract_strided_slice %58 {offsets = [0, 0], sizes = [40, 32], strides = [1, 1]} : vector<40x96xf32> to vector<40x32xf32>
    %60 = vector.extract_strided_slice %58 {offsets = [0, 32], sizes = [40, 32], strides = [1, 1]} : vector<40x96xf32> to vector<40x32xf32>
    %61 = vector.extract_strided_slice %58 {offsets = [0, 64], sizes = [40, 32], strides = [1, 1]} : vector<40x96xf32> to vector<40x32xf32>
    %62 = arith.mulf %59, %60 : vector<40x32xf32>
    %cst_47 = arith.constant 1.000000e+00 : f32
    %63 = vector.broadcast %cst_47 : f32 to vector<8x32xf32>
    %cst_48 = arith.constant dense<0.000000e+00> : vector<8x40xf32>
    %64 = tpu.matmul %63, %62, %cst_48 {dimension_numbers = #tpu.dot_dimension_numbers<[1], [1], [0], [0], [0, 0, 1, 0], [], []>} : vector<8x32xf32>, vector<40x32xf32>, vector<8x40xf32> -> vector<8x40xf32>
    %65 = vector.extract_strided_slice %64 {offsets = [0, 0], sizes = [1, 40], strides = [1, 1]} : vector<8x40xf32> to vector<1x40xf32>
    %cst_49 = arith.constant 0.176776692 : f32
    %66 = vector.broadcast %cst_49 : f32 to vector<1x40xf32>
    %67 = arith.mulf %65, %66 : vector<1x40xf32>
    %c0_50 = arith.constant 0 : index
    %c0_51 = arith.constant 0 : index
    %c0_52 = arith.constant 0 : index
    %68 = vector.load %arg5[%c0_50, %c0_51, %c0_52] : memref<1x16x40xf32, #tpu.memory_space<vmem>>, vector<1x16x40xf32>
    %69 = vector.shape_cast %68 : vector<1x16x40xf32> to vector<16x40xf32>
    %cst_53 = arith.constant 5.000000e-01 : f32
    %70 = vector.broadcast %cst_53 : f32 to vector<16x40xf32>
    %71 = arith.cmpf ogt, %69, %70 : vector<16x40xf32>
    %cst_54 = arith.constant -1.000000e+30 : f32
    %72 = vector.shape_cast %67 : vector<1x40xf32> to vector<1x40xf32>
    %73 = vector.broadcast %72 : vector<1x40xf32> to vector<16x40xf32>
    %74 = vector.broadcast %cst_54 : f32 to vector<16x40xf32>
    %75 = arith.select %71, %73, %74 : vector<16x40xi1>, vector<16x40xf32>
    %cst_55 = arith.constant 0.000000e+00 : f32
    %76 = vector.broadcast %cst_55 : f32 to vector<1x40xf32>
    %77 = arith.subf %76, %67 : vector<1x40xf32>
    %cst_56 = arith.constant -1.000000e+30 : f32
    %78 = vector.shape_cast %77 : vector<1x40xf32> to vector<1x40xf32>
    %79 = vector.broadcast %78 : vector<1x40xf32> to vector<16x40xf32>
    %80 = vector.broadcast %cst_56 : f32 to vector<16x40xf32>
    %81 = arith.select %71, %79, %80 : vector<16x40xi1>, vector<16x40xf32>
    %cst_57 = arith.constant dense<0xFF800000> : vector<16xf32>
    %82 = vector.multi_reduction <maximumf>, %75, %cst_57 [1] : vector<16x40xf32> to vector<16xf32>
    %83 = vector.shape_cast %82 : vector<16xf32> to vector<16x1xf32>
    %cst_58 = arith.constant dense<0xFF800000> : vector<16xf32>
    %84 = vector.multi_reduction <maximumf>, %81, %cst_58 [1] : vector<16x40xf32> to vector<16xf32>
    %85 = vector.shape_cast %84 : vector<16xf32> to vector<16x1xf32>
    %86 = vector.broadcast %83 : vector<16x1xf32> to vector<16x40xf32>
    %87 = arith.subf %75, %86 : vector<16x40xf32>
    %88 = math.exp %87 : vector<16x40xf32>
    %cst_59 = arith.constant 0.000000e+00 : f32
    %89 = vector.broadcast %cst_59 : f32 to vector<16x40xf32>
    %90 = arith.select %71, %88, %89 : vector<16x40xi1>, vector<16x40xf32>
    %91 = vector.broadcast %85 : vector<16x1xf32> to vector<16x40xf32>
    %92 = arith.subf %81, %91 : vector<16x40xf32>
    %93 = math.exp %92 : vector<16x40xf32>
    %cst_60 = arith.constant 0.000000e+00 : f32
    %94 = vector.broadcast %cst_60 : f32 to vector<16x40xf32>
    %95 = arith.select %71, %93, %94 : vector<16x40xi1>, vector<16x40xf32>
    %cst_61 = arith.constant dense<0.000000e+00> : vector<16xf32>
    %96 = vector.multi_reduction <add>, %90, %cst_61 [1] : vector<16x40xf32> to vector<16xf32>
    %97 = vector.shape_cast %96 : vector<16xf32> to vector<16x1xf32>
    %cst_62 = arith.constant 1.000000e-30 : f32
    %98 = vector.broadcast %cst_62 : f32 to vector<16x1xf32>
    %99 = arith.maximumf %97, %98 : vector<16x1xf32>
    %cst_63 = arith.constant dense<0.000000e+00> : vector<16xf32>
    %100 = vector.multi_reduction <add>, %95, %cst_63 [1] : vector<16x40xf32> to vector<16xf32>
    %101 = vector.shape_cast %100 : vector<16xf32> to vector<16x1xf32>
    %cst_64 = arith.constant 1.000000e-30 : f32
    %102 = vector.broadcast %cst_64 : f32 to vector<16x1xf32>
    %103 = arith.maximumf %101, %102 : vector<16x1xf32>
    %104 = tpu.concatenate %90, %95 in 0 : vector<16x40xf32>, vector<16x40xf32> -> vector<32x40xf32>
    %cst_65 = arith.constant dense<0.000000e+00> : vector<32x32xf32>
    %105 = tpu.matmul %104, %61, %cst_65 {dimension_numbers = #tpu.dot_dimension_numbers<[1], [0], [0], [1], [0, 0, 1, 1], [], []>} : vector<32x40xf32>, vector<40x32xf32>, vector<32x32xf32> -> vector<32x32xf32>
    %c0_66 = arith.constant 0 : index
    %c0_67 = arith.constant 0 : index
    %c0_68 = arith.constant 0 : index
    %106 = vector.load %arg6[%c0_66, %c0_67, %c0_68] : memref<1x16x1xf32, #tpu.memory_space<vmem>>, vector<1x16x1xf32>
    %107 = vector.shape_cast %106 : vector<1x16x1xf32> to vector<16x1xf32>
    %108 = vector.extract_strided_slice %105 {offsets = [0, 0], sizes = [16, 32], strides = [1, 1]} : vector<32x32xf32> to vector<16x32xf32>
    %109 = tpu.reciprocal %99 {approx = true} : vector<16x1xf32> -> vector<16x1xf32>
    %110 = arith.mulf %107, %109 : vector<16x1xf32>
    %111 = vector.broadcast %110 : vector<16x1xf32> to vector<16x32xf32>
    %112 = arith.mulf %108, %111 : vector<16x32xf32>
    %113 = vector.extract_strided_slice %105 {offsets = [16, 0], sizes = [16, 32], strides = [1, 1]} : vector<32x32xf32> to vector<16x32xf32>
    %114 = tpu.reciprocal %103 {approx = true} : vector<16x1xf32> -> vector<16x1xf32>
    %115 = arith.mulf %107, %114 : vector<16x1xf32>
    %116 = vector.broadcast %115 : vector<16x1xf32> to vector<16x32xf32>
    %117 = arith.mulf %113, %116 : vector<16x32xf32>
    %c0_69 = arith.constant 0 : index
    %c0_70 = arith.constant 0 : index
    %118 = vector.load %arg15[%c0_69, %c0_70] : memref<32x32xf32, #tpu.memory_space<vmem>>, vector<32x32xf32>
    %cst_71 = arith.constant dense<0.000000e+00> : vector<16x32xf32>
    %119 = tpu.matmul %112, %118, %cst_71 {dimension_numbers = #tpu.dot_dimension_numbers<[1], [0], [0], [1], [0, 0, 1, 1], [], []>} : vector<16x32xf32>, vector<32x32xf32>, vector<16x32xf32> -> vector<16x32xf32>
    %c0_72 = arith.constant 0 : index
    %c0_73 = arith.constant 0 : index
    %120 = vector.load %arg16[%c0_72, %c0_73] : memref<32x96xf32, #tpu.memory_space<vmem>>, vector<32x96xf32>
    %cst_74 = arith.constant dense<0.000000e+00> : vector<16x96xf32>
    %121 = tpu.matmul %119, %120, %cst_74 {dimension_numbers = #tpu.dot_dimension_numbers<[1], [0], [0], [1], [0, 0, 1, 1], [], []>} : vector<16x32xf32>, vector<32x96xf32>, vector<16x96xf32> -> vector<16x96xf32>
    %122 = vector.extract_strided_slice %7 {offsets = [4, 0], sizes = [1, 96], strides = [1, 1]} : vector<8x96xf32> to vector<1x96xf32>
    %123 = vector.broadcast %122 : vector<1x96xf32> to vector<16x96xf32>
    %124 = arith.addf %121, %123 : vector<16x96xf32>
    %c0_75 = arith.constant 0 : index
    %c0_76 = arith.constant 0 : index
    %125 = vector.load %arg17[%c0_75, %c0_76] : memref<32x96xf32, #tpu.memory_space<vmem>>, vector<32x96xf32>
    %cst_77 = arith.constant dense<0.000000e+00> : vector<16x96xf32>
    %126 = tpu.matmul %5, %125, %cst_77 {dimension_numbers = #tpu.dot_dimension_numbers<[1], [0], [0], [1], [0, 0, 1, 1], [], []>} : vector<16x32xf32>, vector<32x96xf32>, vector<16x96xf32> -> vector<16x96xf32>
    %127 = vector.extract_strided_slice %7 {offsets = [5, 0], sizes = [1, 96], strides = [1, 1]} : vector<8x96xf32> to vector<1x96xf32>
    %128 = vector.broadcast %127 : vector<1x96xf32> to vector<16x96xf32>
    %129 = arith.addf %126, %128 : vector<16x96xf32>
    %130 = vector.extract_strided_slice %124 {offsets = [0, 0], sizes = [16, 32], strides = [1, 1]} : vector<16x96xf32> to vector<16x32xf32>
    %131 = vector.extract_strided_slice %129 {offsets = [0, 0], sizes = [16, 32], strides = [1, 1]} : vector<16x96xf32> to vector<16x32xf32>
    %132 = arith.addf %130, %131 : vector<16x32xf32>
    %133 = arith.negf %132 : vector<16x32xf32>
    %134 = math.exp %133 : vector<16x32xf32>
    %cst_78 = arith.constant 1.000000e+00 : f32
    %135 = vector.broadcast %cst_78 : f32 to vector<16x32xf32>
    %136 = arith.addf %135, %134 : vector<16x32xf32>
    %137 = arith.divf %135, %136 : vector<16x32xf32>
    %138 = vector.extract_strided_slice %124 {offsets = [0, 32], sizes = [16, 32], strides = [1, 1]} : vector<16x96xf32> to vector<16x32xf32>
    %139 = vector.extract_strided_slice %129 {offsets = [0, 32], sizes = [16, 32], strides = [1, 1]} : vector<16x96xf32> to vector<16x32xf32>
    %140 = arith.addf %138, %139 : vector<16x32xf32>
    %141 = arith.negf %140 : vector<16x32xf32>
    %142 = math.exp %141 : vector<16x32xf32>
    %cst_79 = arith.constant 1.000000e+00 : f32
    %143 = vector.broadcast %cst_79 : f32 to vector<16x32xf32>
    %144 = arith.addf %143, %142 : vector<16x32xf32>
    %145 = arith.divf %143, %144 : vector<16x32xf32>
    %146 = vector.extract_strided_slice %124 {offsets = [0, 64], sizes = [16, 32], strides = [1, 1]} : vector<16x96xf32> to vector<16x32xf32>
    %147 = vector.extract_strided_slice %129 {offsets = [0, 64], sizes = [16, 32], strides = [1, 1]} : vector<16x96xf32> to vector<16x32xf32>
    %148 = arith.mulf %137, %147 : vector<16x32xf32>
    %149 = arith.addf %146, %148 : vector<16x32xf32>
    %150 = math.tanh %149 : vector<16x32xf32>
    %cst_80 = arith.constant 1.000000e+00 : f32
    %151 = vector.broadcast %cst_80 : f32 to vector<16x32xf32>
    %152 = arith.subf %151, %145 : vector<16x32xf32>
    %153 = arith.mulf %152, %150 : vector<16x32xf32>
    %154 = arith.mulf %145, %5 : vector<16x32xf32>
    %155 = arith.addf %153, %154 : vector<16x32xf32>
    %c0_81 = arith.constant 0 : index
    %c0_82 = arith.constant 0 : index
    %156 = vector.load %arg24[%c0_81, %c0_82] : memref<16x32xf32, #tpu.memory_space<vmem>>, vector<16x32xf32>
    tpu.vector_store %arg24[%c0_81, %c0_82], %39 {strides = array<i32>} : memref<16x32xf32, #tpu.memory_space<vmem>>, vector<16x32xf32>,
    %c0_83 = arith.constant 0 : index
    %c0_84 = arith.constant 0 : index
    %157 = vector.load %arg25[%c0_83, %c0_84] : memref<16x32xf32, #tpu.memory_space<vmem>>, vector<16x32xf32>
    tpu.vector_store %arg25[%c0_83, %c0_84], %117 {strides = array<i32>} : memref<16x32xf32, #tpu.memory_space<vmem>>, vector<16x32xf32>,
    %c0_85 = arith.constant 0 : index
    %c0_86 = arith.constant 0 : index
    %158 = vector.load %arg26[%c0_85, %c0_86] : memref<16x32xf32, #tpu.memory_space<vmem>>, vector<16x32xf32>
    tpu.vector_store %arg26[%c0_85, %c0_86], %155 {strides = array<i32>} : memref<16x32xf32, #tpu.memory_space<vmem>>, vector<16x32xf32>,
    %c0_87 = arith.constant 0 : index
    %c0_88 = arith.constant 0 : index
    %159 = vector.load %arg21[%c0_87, %c0_88] : memref<16x32xf32, #tpu.memory_space<vmem>>, vector<16x32xf32>
    tpu.vector_store %arg21[%c0_87, %c0_88], %39 {strides = array<i32>} : memref<16x32xf32, #tpu.memory_space<vmem>>, vector<16x32xf32>,
    %c0_89 = arith.constant 0 : index
    %c0_90 = arith.constant 0 : index
    %160 = vector.load %arg22[%c0_89, %c0_90] : memref<16x32xf32, #tpu.memory_space<vmem>>, vector<16x32xf32>
    tpu.vector_store %arg22[%c0_89, %c0_90], %117 {strides = array<i32>} : memref<16x32xf32, #tpu.memory_space<vmem>>, vector<16x32xf32>,
    %c0_91 = arith.constant 0 : index
    %c0_92 = arith.constant 0 : index
    %161 = vector.load %arg19[%c0_91, %c0_92] : memref<4x16xf32, #tpu.memory_space<vmem>>, vector<4x16xf32>
    %cst_93 = arith.constant dense<0.000000e+00> : vector<4x32xf32>
    %162 = tpu.matmul %161, %39, %cst_93 {dimension_numbers = #tpu.dot_dimension_numbers<[1], [0], [0], [1], [0, 0, 1, 1], [], []>} : vector<4x16xf32>, vector<16x32xf32>, vector<4x32xf32> -> vector<4x32xf32>
    %c0_94 = arith.constant 0 : index
    %c0_95 = arith.constant 0 : index
    %163 = vector.load %arg20[%c0_94, %c0_95] : memref<4x32xf32, #tpu.memory_space<vmem>>, vector<4x32xf32>
    %164 = arith.mulf %162, %163 : vector<4x32xf32>
    %cst_96 = arith.constant dense<0.000000e+00> : vector<4x16xf32>
    %165 = tpu.matmul %164, %39, %cst_96 {dimension_numbers = #tpu.dot_dimension_numbers<[1], [1], [0], [0], [0, 0, 1, 0], [], []>} : vector<4x32xf32>, vector<16x32xf32>, vector<4x16xf32> -> vector<4x16xf32>
    %c0_97 = arith.constant 0 : index
    %c0_98 = arith.constant 0 : index
    %166 = vector.load %arg23[%c0_97, %c0_98] : memref<4x16xf32, #tpu.memory_space<vmem>>, vector<4x16xf32>
    tpu.vector_store %arg23[%c0_97, %c0_98], %165 {strides = array<i32>} : memref<4x16xf32, #tpu.memory_space<vmem>>, vector<4x16xf32>,
    return
  }
  func.func @transform_0(%arg0: i32) -> (i32, i32, i32) {
    %c0_i32 = arith.constant 0 : i32
    %c0_i32_0 = arith.constant 0 : i32
    %c0_i32_1 = arith.constant 0 : i32
    return %arg0, %c0_i32, %c0_i32_0 : i32, i32, i32
  }
  func.func @transform_1(%arg0: i32) -> (i32, i32, i32) {
    %c0_i32 = arith.constant 0 : i32
    %c0_i32_0 = arith.constant 0 : i32
    %c0_i32_1 = arith.constant 0 : i32
    return %arg0, %c0_i32, %c0_i32_0 : i32, i32, i32
  }
  func.func @transform_2(%arg0: i32) -> (i32, i32, i32) {
    %c0_i32 = arith.constant 0 : i32
    %c0_i32_0 = arith.constant 0 : i32
    %c0_i32_1 = arith.constant 0 : i32
    return %arg0, %c0_i32, %c0_i32_0 : i32, i32, i32
  }
  func.func @transform_3(%arg0: i32) -> (i32, i32, i32) {
    %c0_i32 = arith.constant 0 : i32
    %c0_i32_0 = arith.constant 0 : i32
    %c0_i32_1 = arith.constant 0 : i32
    return %arg0, %c0_i32, %c0_i32_0 : i32, i32, i32
  }
  func.func @transform_4(%arg0: i32) -> (i32, i32, i32) {
    %c0_i32 = arith.constant 0 : i32
    %c0_i32_0 = arith.constant 0 : i32
    %c0_i32_1 = arith.constant 0 : i32
    return %arg0, %c0_i32, %c0_i32_0 : i32, i32, i32
  }
  func.func @transform_5(%arg0: i32) -> (i32, i32, i32) {
    %c0_i32 = arith.constant 0 : i32
    %c0_i32_0 = arith.constant 0 : i32
    %c0_i32_1 = arith.constant 0 : i32
    return %arg0, %c0_i32, %c0_i32_0 : i32, i32, i32
  }
  func.func @transform_6(%arg0: i32) -> (i32, i32) {
    %c0_i32 = arith.constant 0 : i32
    %c0_i32_0 = arith.constant 0 : i32
    %c0_i32_1 = arith.constant 0 : i32
    return %c0_i32, %c0_i32_0 : i32, i32
  }
  func.func @transform_7(%arg0: i32) -> (i32, i32) {
    %c0_i32 = arith.constant 0 : i32
    %c0_i32_0 = arith.constant 0 : i32
    %c0_i32_1 = arith.constant 0 : i32
    return %c0_i32, %c0_i32_0 : i32, i32
  }
  func.func @transform_8(%arg0: i32) -> (i32, i32) {
    %c0_i32 = arith.constant 0 : i32
    %c0_i32_0 = arith.constant 0 : i32
    %c0_i32_1 = arith.constant 0 : i32
    return %c0_i32, %c0_i32_0 : i32, i32
  }
  func.func @transform_9(%arg0: i32) -> (i32, i32) {
    %c0_i32 = arith.constant 0 : i32
    %c0_i32_0 = arith.constant 0 : i32
    %c0_i32_1 = arith.constant 0 : i32
    return %c0_i32, %c0_i32_0 : i32, i32
  }
  func.func @transform_10(%arg0: i32) -> (i32, i32) {
    %c0_i32 = arith.constant 0 : i32
    %c0_i32_0 = arith.constant 0 : i32
    %c0_i32_1 = arith.constant 0 : i32
    return %c0_i32, %c0_i32_0 : i32, i32
  }
  func.func @transform_11(%arg0: i32) -> (i32, i32) {
    %c0_i32 = arith.constant 0 : i32
    %c0_i32_0 = arith.constant 0 : i32
    %c0_i32_1 = arith.constant 0 : i32
    return %c0_i32, %c0_i32_0 : i32, i32
  }
  func.func @transform_12(%arg0: i32) -> (i32, i32) {
    %c0_i32 = arith.constant 0 : i32
    %c0_i32_0 = arith.constant 0 : i32
    %c0_i32_1 = arith.constant 0 : i32
    return %c0_i32, %c0_i32_0 : i32, i32
  }
  func.func @transform_13(%arg0: i32) -> (i32, i32) {
    %c0_i32 = arith.constant 0 : i32
    %c0_i32_0 = arith.constant 0 : i32
    %c0_i32_1 = arith.constant 0 : i32
    return %c0_i32, %c0_i32_0 : i32, i32
  }
  func.func @transform_14(%arg0: i32) -> (i32, i32) {
    %c0_i32 = arith.constant 0 : i32
    %c0_i32_0 = arith.constant 0 : i32
    %c0_i32_1 = arith.constant 0 : i32
    return %c0_i32, %c0_i32_0 : i32, i32
  }
  func.func @transform_15(%arg0: i32) -> (i32, i32) {
    %c0_i32 = arith.constant 0 : i32
    %c0_i32_0 = arith.constant 0 : i32
    %c0_i32_1 = arith.constant 0 : i32
    return %c0_i32, %c0_i32_0 : i32, i32
  }
  func.func @transform_16(%arg0: i32) -> (i32, i32) {
    %c0_i32 = arith.constant 0 : i32
    %c0_i32_0 = arith.constant 0 : i32
    %c0_i32_1 = arith.constant 0 : i32
    return %c0_i32, %c0_i32_0 : i32, i32
  }
  func.func @transform_17(%arg0: i32) -> (i32, i32) {
    %c0_i32 = arith.constant 0 : i32
    %c0_i32_0 = arith.constant 0 : i32
    %c0_i32_1 = arith.constant 0 : i32
    return %c0_i32, %c0_i32_0 : i32, i32
  }
  func.func @transform_18(%arg0: i32) -> (i32, i32) {
    %c0_i32 = arith.constant 0 : i32
    %c0_i32_0 = arith.constant 0 : i32
    %c0_i32_1 = arith.constant 0 : i32
    return %c0_i32, %c0_i32_0 : i32, i32
  }
  func.func @transform_19(%arg0: i32) -> (i32, i32) {
    %c0_i32 = arith.constant 0 : i32
    %c0_i32_0 = arith.constant 0 : i32
    %c0_i32_1 = arith.constant 0 : i32
    return %c0_i32, %c0_i32_0 : i32, i32
  }
  func.func @transform_20(%arg0: i32) -> (i32, i32) {
    %c0_i32 = arith.constant 0 : i32
    %c0_i32_0 = arith.constant 0 : i32
    %c0_i32_1 = arith.constant 0 : i32
    return %c0_i32, %c0_i32_0 : i32, i32
  }
  func.func @transform_21(%arg0: i32) -> (i32, i32) {
    %c0_i32 = arith.constant 0 : i32
    %c0_i32_0 = arith.constant 0 : i32
    %c0_i32_1 = arith.constant 0 : i32
    return %c0_i32, %c0_i32_0 : i32, i32
  }
  func.func @transform_22(%arg0: i32) -> (i32, i32) {
    %c0_i32 = arith.constant 0 : i32
    %c0_i32_0 = arith.constant 0 : i32
    %c0_i32_1 = arith.constant 0 : i32
    return %c0_i32, %c0_i32_0 : i32, i32
  }
}

module attributes {stable_mosaic.version = 11 : i64} {
  func.func @_virtual_kernel(%arg0: i32, %arg1: memref<16x32xf32, #tpu.memory_space<vmem>>, %arg2: memref<16x32xf32, #tpu.memory_space<vmem>>, %arg3: memref<16x32xf32, #tpu.memory_space<vmem>>, %arg4: memref<16x32xf32, #tpu.memory_space<vmem>>, %arg5: memref<32x32xf32, #tpu.memory_space<vmem>>, %arg6: memref<32x64xf32, #tpu.memory_space<vmem>>, %arg7: memref<32x64xf32, #tpu.memory_space<vmem>>, %arg8: memref<64x32xf32, #tpu.memory_space<vmem>>, %arg9: memref<8x96xf32, #tpu.memory_space<vmem>>, %arg10: memref<4x16xf32, #tpu.memory_space<vmem>>, %arg11: memref<4x32xf32, #tpu.memory_space<vmem>>, %arg12: memref<4x16xf32, #tpu.memory_space<vmem>>) attributes {dimension_semantics = [#tpu.dimension_semantics<arbitrary>], iteration_bounds = array<i64: 1>, scalar_prefetch = 0 : i64, scratch_operands = 0 : i64, tpu.core_type = #tpu.core_type<tc>, window_params = [{pipeline_mode = #tpu.pipeline_mode<synchronous>, transform_indices = @transform_0, window_bounds = array<i64: 16, 32>}, {pipeline_mode = #tpu.pipeline_mode<synchronous>, transform_indices = @transform_1, window_bounds = array<i64: 16, 32>}, {pipeline_mode = #tpu.pipeline_mode<synchronous>, transform_indices = @transform_2, window_bounds = array<i64: 16, 32>}, {pipeline_mode = #tpu.pipeline_mode<synchronous>, transform_indices = @transform_3, window_bounds = array<i64: 16, 32>}, {pipeline_mode = #tpu.pipeline_mode<synchronous>, transform_indices = @transform_4, window_bounds = array<i64: 32, 32>}, {pipeline_mode = #tpu.pipeline_mode<synchronous>, transform_indices = @transform_5, window_bounds = array<i64: 32, 64>}, {pipeline_mode = #tpu.pipeline_mode<synchronous>, transform_indices = @transform_6, window_bounds = array<i64: 32, 64>}, {pipeline_mode = #tpu.pipeline_mode<synchronous>, transform_indices = @transform_7, window_bounds = array<i64: 64, 32>}, {pipeline_mode = #tpu.pipeline_mode<synchronous>, transform_indices = @transform_8, window_bounds = array<i64: 8, 96>}, {pipeline_mode = #tpu.pipeline_mode<synchronous>, transform_indices = @transform_9, window_bounds = array<i64: 4, 16>}, {pipeline_mode = #tpu.pipeline_mode<synchronous>, transform_indices = @transform_10, window_bounds = array<i64: 4, 32>}, {pipeline_mode = #tpu.pipeline_mode<synchronous>, transform_indices = @transform_11, window_bounds = array<i64: 4, 16>}]} {
    %c0 = arith.constant 0 : index
    %c0_0 = arith.constant 0 : index
    %0 = vector.load %arg9[%c0, %c0_0] : memref<8x96xf32, #tpu.memory_space<vmem>>, vector<8x96xf32>
    %c0_1 = arith.constant 0 : index
    %c0_2 = arith.constant 0 : index
    %1 = vector.load %arg3[%c0_1, %c0_2] : memref<16x32xf32, #tpu.memory_space<vmem>>, vector<16x32xf32>
    %c0_3 = arith.constant 0 : index
    %c0_4 = arith.constant 0 : index
    %2 = vector.load %arg5[%c0_3, %c0_4] : memref<32x32xf32, #tpu.memory_space<vmem>>, vector<32x32xf32>
    %cst = arith.constant dense<0.000000e+00> : vector<16x32xf32>
    %3 = tpu.matmul %1, %2, %cst {dimension_numbers = #tpu.dot_dimension_numbers<[1], [0], [0], [1], [0, 0, 1, 1], [], []>} : vector<16x32xf32>, vector<32x32xf32>, vector<16x32xf32> -> vector<16x32xf32>
    %4 = vector.extract_strided_slice %0 {offsets = [0, 0], sizes = [1, 32], strides = [1, 1]} : vector<8x96xf32> to vector<1x32xf32>
    %5 = vector.broadcast %4 : vector<1x32xf32> to vector<16x32xf32>
    %6 = arith.addf %3, %5 : vector<16x32xf32>
    %7 = arith.negf %6 : vector<16x32xf32>
    %8 = math.exp %7 : vector<16x32xf32>
    %cst_5 = arith.constant 1.000000e+00 : f32
    %9 = vector.broadcast %cst_5 : f32 to vector<16x32xf32>
    %10 = arith.addf %9, %8 : vector<16x32xf32>
    %11 = arith.divf %9, %10 : vector<16x32xf32>
    %c0_6 = arith.constant 0 : index
    %c0_7 = arith.constant 0 : index
    %12 = vector.load %arg2[%c0_6, %c0_7] : memref<16x32xf32, #tpu.memory_space<vmem>>, vector<16x32xf32>
    %13 = arith.mulf %11, %12 : vector<16x32xf32>
    %cst_8 = arith.constant 1.000000e+00 : f32
    %14 = vector.broadcast %cst_8 : f32 to vector<16x32xf32>
    %15 = arith.subf %14, %11 : vector<16x32xf32>
    %c0_9 = arith.constant 0 : index
    %c0_10 = arith.constant 0 : index
    %16 = vector.load %arg4[%c0_9, %c0_10] : memref<16x32xf32, #tpu.memory_space<vmem>>, vector<16x32xf32>
    %17 = arith.mulf %15, %16 : vector<16x32xf32>
    %18 = arith.addf %13, %17 : vector<16x32xf32>
    %c0_11 = arith.constant 0 : index
    %c0_12 = arith.constant 0 : index
    %19 = vector.load %arg6[%c0_11, %c0_12] : memref<32x64xf32, #tpu.memory_space<vmem>>, vector<32x64xf32>
    %cst_13 = arith.constant dense<0.000000e+00> : vector<16x64xf32>
    %20 = tpu.matmul %18, %19, %cst_13 {dimension_numbers = #tpu.dot_dimension_numbers<[1], [0], [0], [1], [0, 0, 1, 1], [], []>} : vector<16x32xf32>, vector<32x64xf32>, vector<16x64xf32> -> vector<16x64xf32>
    %c0_14 = arith.constant 0 : index
    %c0_15 = arith.constant 0 : index
    %21 = vector.load %arg1[%c0_14, %c0_15] : memref<16x32xf32, #tpu.memory_space<vmem>>, vector<16x32xf32>
    %c0_16 = arith.constant 0 : index
    %c0_17 = arith.constant 0 : index
    %22 = vector.load %arg7[%c0_16, %c0_17] : memref<32x64xf32, #tpu.memory_space<vmem>>, vector<32x64xf32>
    %cst_18 = arith.constant dense<0.000000e+00> : vector<16x64xf32>
    %23 = tpu.matmul %21, %22, %cst_18 {dimension_numbers = #tpu.dot_dimension_numbers<[1], [0], [0], [1], [0, 0, 1, 1], [], []>} : vector<16x32xf32>, vector<32x64xf32>, vector<16x64xf32> -> vector<16x64xf32>
    %24 = arith.addf %20, %23 : vector<16x64xf32>
    %25 = vector.extract_strided_slice %0 {offsets = [1, 0], sizes = [1, 64], strides = [1, 1]} : vector<8x96xf32> to vector<1x64xf32>
    %26 = vector.broadcast %25 : vector<1x64xf32> to vector<16x64xf32>
    %27 = arith.addf %24, %26 : vector<16x64xf32>
    %cst_19 = arith.constant 0.000000e+00 : f32
    %28 = vector.broadcast %cst_19 : f32 to vector<16x64xf32>
    %29 = arith.maximumf %27, %28 : vector<16x64xf32>
    %c0_20 = arith.constant 0 : index
    %c0_21 = arith.constant 0 : index
    %30 = vector.load %arg8[%c0_20, %c0_21] : memref<64x32xf32, #tpu.memory_space<vmem>>, vector<64x32xf32>
    %cst_22 = arith.constant dense<0.000000e+00> : vector<16x32xf32>
    %31 = tpu.matmul %29, %30, %cst_22 {dimension_numbers = #tpu.dot_dimension_numbers<[1], [0], [0], [1], [0, 0, 1, 1], [], []>} : vector<16x64xf32>, vector<64x32xf32>, vector<16x32xf32> -> vector<16x32xf32>
    %32 = vector.extract_strided_slice %0 {offsets = [2, 0], sizes = [1, 32], strides = [1, 1]} : vector<8x96xf32> to vector<1x32xf32>
    %33 = vector.broadcast %32 : vector<1x32xf32> to vector<16x32xf32>
    %34 = arith.addf %31, %33 : vector<16x32xf32>
    %c0_23 = arith.constant 0 : index
    %c0_24 = arith.constant 0 : index
    %35 = vector.load %arg10[%c0_23, %c0_24] : memref<4x16xf32, #tpu.memory_space<vmem>>, vector<4x16xf32>
    %cst_25 = arith.constant dense<0.000000e+00> : vector<4x32xf32>
    %36 = tpu.matmul %35, %34, %cst_25 {dimension_numbers = #tpu.dot_dimension_numbers<[1], [0], [0], [1], [0, 0, 1, 1], [], []>} : vector<4x16xf32>, vector<16x32xf32>, vector<4x32xf32> -> vector<4x32xf32>
    %c0_26 = arith.constant 0 : index
    %c0_27 = arith.constant 0 : index
    %37 = vector.load %arg11[%c0_26, %c0_27] : memref<4x32xf32, #tpu.memory_space<vmem>>, vector<4x32xf32>
    %38 = arith.mulf %36, %37 : vector<4x32xf32>
    %cst_28 = arith.constant dense<0.000000e+00> : vector<4x16xf32>
    %39 = tpu.matmul %38, %34, %cst_28 {dimension_numbers = #tpu.dot_dimension_numbers<[1], [1], [0], [0], [0, 0, 1, 0], [], []>} : vector<4x32xf32>, vector<16x32xf32>, vector<4x16xf32> -> vector<4x16xf32>
    %c0_29 = arith.constant 0 : index
    %c0_30 = arith.constant 0 : index
    %40 = vector.load %arg12[%c0_29, %c0_30] : memref<4x16xf32, #tpu.memory_space<vmem>>, vector<4x16xf32>
    tpu.vector_store %arg12[%c0_29, %c0_30], %39 {strides = array<i32>} : memref<4x16xf32, #tpu.memory_space<vmem>>, vector<4x16xf32>,
    return
  }
  func.func @transform_0(%arg0: i32) -> (i32, i32) {
    %c0_i32 = arith.constant 0 : i32
    %c0_i32_0 = arith.constant 0 : i32
    %c0_i32_1 = arith.constant 0 : i32
    return %c0_i32, %c0_i32_0 : i32, i32
  }
  func.func @transform_1(%arg0: i32) -> (i32, i32) {
    %c0_i32 = arith.constant 0 : i32
    %c0_i32_0 = arith.constant 0 : i32
    %c0_i32_1 = arith.constant 0 : i32
    return %c0_i32, %c0_i32_0 : i32, i32
  }
  func.func @transform_2(%arg0: i32) -> (i32, i32) {
    %c0_i32 = arith.constant 0 : i32
    %c0_i32_0 = arith.constant 0 : i32
    %c0_i32_1 = arith.constant 0 : i32
    return %c0_i32, %c0_i32_0 : i32, i32
  }
  func.func @transform_3(%arg0: i32) -> (i32, i32) {
    %c0_i32 = arith.constant 0 : i32
    %c0_i32_0 = arith.constant 0 : i32
    %c0_i32_1 = arith.constant 0 : i32
    return %c0_i32, %c0_i32_0 : i32, i32
  }
  func.func @transform_4(%arg0: i32) -> (i32, i32) {
    %c0_i32 = arith.constant 0 : i32
    %c0_i32_0 = arith.constant 0 : i32
    %c0_i32_1 = arith.constant 0 : i32
    return %c0_i32, %c0_i32_0 : i32, i32
  }
  func.func @transform_5(%arg0: i32) -> (i32, i32) {
    %c0_i32 = arith.constant 0 : i32
    %c0_i32_0 = arith.constant 0 : i32
    %c0_i32_1 = arith.constant 0 : i32
    return %c0_i32, %c0_i32_0 : i32, i32
  }
  func.func @transform_6(%arg0: i32) -> (i32, i32) {
    %c0_i32 = arith.constant 0 : i32
    %c0_i32_0 = arith.constant 0 : i32
    %c0_i32_1 = arith.constant 0 : i32
    return %c0_i32, %c0_i32_0 : i32, i32
  }
  func.func @transform_7(%arg0: i32) -> (i32, i32) {
    %c0_i32 = arith.constant 0 : i32
    %c0_i32_0 = arith.constant 0 : i32
    %c0_i32_1 = arith.constant 0 : i32
    return %c0_i32, %c0_i32_0 : i32, i32
  }
  func.func @transform_8(%arg0: i32) -> (i32, i32) {
    %c0_i32 = arith.constant 0 : i32
    %c0_i32_0 = arith.constant 0 : i32
    %c0_i32_1 = arith.constant 0 : i32
    return %c0_i32, %c0_i32_0 : i32, i32
  }
  func.func @transform_9(%arg0: i32) -> (i32, i32) {
    %c0_i32 = arith.constant 0 : i32
    %c0_i32_0 = arith.constant 0 : i32
    %c0_i32_1 = arith.constant 0 : i32
    return %c0_i32, %c0_i32_0 : i32, i32
  }
  func.func @transform_10(%arg0: i32) -> (i32, i32) {
    %c0_i32 = arith.constant 0 : i32
    %c0_i32_0 = arith.constant 0 : i32
    %c0_i32_1 = arith.constant 0 : i32
    return %c0_i32, %c0_i32_0 : i32, i32
  }
  func.func @transform_11(%arg0: i32) -> (i32, i32) {
    %c0_i32 = arith.constant 0 : i32
    %c0_i32_0 = arith.constant 0 : i32
    %c0_i32_1 = arith.constant 0 : i32
    return %c0_i32, %c0_i32_0 : i32, i32
  }
}

</mosaic_0001>

<bundles_post_ra>
// kernel: eq.148
= control target key start
LH: loop header
LB: loop body
LE: loop exit
PB: predicated region body
PF: predicated region fallthrough
CT: control target
= control target key end

     0   :  { %vm7_vm0 = vcmask 31744   ;;  %s37_s8 = smov 4   ;;  %s38_s9 = smov 8   ;;  %vm13_vm1 = vcmask 130144   ;;  %vm19_vm2 = vcmask 97344   ;;  %vm25_vm3 = vcmask 64544   ;;  %s55_s0 = inlined_call_operand.vmem [shape: s32[4,4], index: 0, kind: input, shape index: {}]   ;;  %s56_s1 = inlined_call_operand.vmem [shape: s32[16], index: 1, kind: output, shape index: {}]  }
   0x1   :  { %v4_v0 = vld [vmem:[%s55_s0] sm:$0xf]  ;;  %s36_s0 = smov 12  }
   0x2   :  { %5 = vst [vmem:[#allocation1] sm:$0xf] %v4_v0 }
   0x9   :  { %v10_v1 = vld [vmem:[#allocation1 + $0x3] sm:$0x1]   ;;  %v22_v2 = vld [vmem:[#allocation1 + $0x1] sm:$0x1]   ;;  %v6_v3 = vld [vmem:[#allocation1] sm:$0x1]  }
   0xa   :  { %11 = vrot.lane.b32.xlu0 %v10_v1, %s36_s0  ;;  %23 = vrot.lane.b32.xlu1 %v22_v2, %s37_s8  ;;  %v16_v4 = vld [vmem:[#allocation1 + $0x2] sm:$0x1]   ;;  %8 = vst.msk [vmem:[#allocation0] sm:$0x1] %vm7_vm0, %v6_v3  }
   0xe   :  { %17 = vrot.lane.b32.xlu0 %v16_v4, %s38_s9 }
  0x7c   :  { %v12_v5 = vpop.permute.xlu0 %11   ;;  %v24_v6 = vpop.permute.xlu1 %23  }
  0x7d   :  { %14 = vst.msk [vmem:[#allocation0] sm:$0x1] %vm13_vm1, %v12_v5  }
  0x80   :  { %v18_v7 = vpop.permute.xlu0 %17  }
  0x81   :  { %20 = vst.msk [vmem:[#allocation0] sm:$0x1] %vm19_vm2, %v18_v7  }
  0x82   :  { %26 = vst.msk [vmem:[#allocation0] sm:$0x1] %vm25_vm3, %v24_v6  }
  0x89   :  { %v30_v8 = vld [vmem:[#allocation0] sm:$0x1] }
  0x8a   :  { %32 = vst [vmem:[%s56_s1] sm:$0x1] %v30_v8 }

// kernel: dimnet_forward.3
= control target key start
LH: loop header
LB: loop body
LE: loop exit
PB: predicated region body
PF: predicated region fallthrough
CT: control target
= control target key end

     0   :  { %vm50_vm0 = vcmask 261120   ;;  %s979_s0 = inlined_call_operand.vmem [shape: f32[16,32], index: 0, kind: input, shape index: {}]   ;;  %s980_s1 = inlined_call_operand.vmem [shape: f32[16,32], index: 1, kind: input, shape index: {}]   ;;  %s981_s2 = inlined_call_operand.vmem [shape: f32[16,32], index: 2, kind: input, shape index: {}]   ;;  %s982_s3 = inlined_call_operand.vmem [shape: f32[16,32], index: 3, kind: input, shape index: {}]   ;;  %s983_s4 = inlined_call_operand.vmem [shape: f32[32,32], index: 4, kind: input, shape index: {}]   ;;  %s984_s5 = inlined_call_operand.vmem [shape: f32[32,64], index: 5, kind: input, shape index: {}]   ;;  %s985_s6 = inlined_call_operand.vmem [shape: f32[32,64], index: 6, kind: input, shape index: {}]   ;;  %s986_s7 = inlined_call_operand.vmem [shape: f32[64,32], index: 7, kind: input, shape index: {}]   ;;  %s987_s8 = inlined_call_operand.vmem [shape: f32[8,96], index: 8, kind: input, shape index: {}]   ;;  %s988_s9 = inlined_call_operand.vmem [shape: f32[4,16], index: 9, kind: input, shape index: {}]   ;;  %s989_s10 = inlined_call_operand.vmem [shape: f32[4,32], index: 10, kind: input, shape index: {}]   ;;  %s990_s11 = inlined_call_operand.hbm [shape: f32[4,16], index: 11, kind: output, shape index: {}]  }
   0x1   :  { %v42_v0 = vld [vmem:[%s983_s4] sm:$0xff]  ;;  %v43_v1 = vld [vmem:[%s983_s4 + $0x8] sm:$0xff]  ;;  %v44_v2 = vld [vmem:[%s983_s4 + $0x10] sm:$0xff] }
   0x2   :  { %v716_v3 = vpack.c.bf16 %v43_v1, %v42_v0  ;;  %v45_v4 = vld [vmem:[%s983_s4 + $0x18] sm:$0xff]  ;;  %v40_v5 = vld [vmem:[%s981_s2] sm:$0xff] }
   0x3   :  { %v720_v6 = vpack.c.bf16 %v45_v4, %v44_v2  ;;  %658 = vmatprep.mubr.msk.f32.mxu0 %vm50_vm0, %v40_v5 }
   0x4   :  { %16 = vsyncpa [#allocation3], 0  ;;  %717 = vmatprep.subr.bf16.mxu0 %v716_v3  ;;  %v41_v7 = vld [vmem:[%s981_s2 + $0x8] sm:$0xff]  ;;  %v162_v8 = vld [vmem:[%s985_s6] sm:$0xff]  ;;  %v46_v31 = vlaneseq  ;;  %vm348_vm1 = vcmask 523264   ;;  %vm802_vm2 = vmmov 0  }
   0x5   :  { %719 = vmatpush3.bf16.msra.mxu0 %v716_v3  ;;  %v163_v9 = vld [vmem:[%s985_s6 + $0x8] sm:$0xff]  ;;  %v164_v11 = vld [vmem:[%s985_s6 + $0x10] sm:$0xff]  ;;  %v165_v12 = vld [vmem:[%s985_s6 + $0x18] sm:$0xff]  ;;  %vm431_vm3 = vcmask 130048   ;;  %vm586_vm5 = vcmask 125952  }
   0x6   :  { %721 = vmatprep.subr.bf16.mxu0 %v720_v6  ;;  %v724_v10 = vpack.c.bf16 %v163_v9, %v162_v8  ;;  %v728_v13 = vpack.c.bf16 %v165_v12, %v164_v11  ;;  %v156_v14 = vld [vmem:[%s984_s5] sm:$0xff]  ;;  %v157_v15 = vld [vmem:[%s984_s5 + $0x8] sm:$0xff]  ;;  %v158_v19 = vld [vmem:[%s984_s5 + $0x10] sm:$0xff]  ;;  %v47_v32 = vshrl.u32 %v46_v31, 7  ;;  %v803_v8 = vmov 0.0  }
   0x7   :  { %v160_v16 = vld [vmem:[%s979_s0] sm:$0xff]  ;;  %v732_v17 = vpack.c.bf16 %v157_v15, %v156_v14  ;;  %v161_v18 = vld [vmem:[%s979_s0 + $0x8] sm:$0xff]  ;;  %v159_v20 = vld [vmem:[%s984_s5 + $0x18] sm:$0xff]  ;;  %s804_s0 = smov [#allocation2]  }
   0x8   :  { %725 = vmatprep.subr.bf16.mxu1 %v724_v10  ;;  %669 = vmatprep.mubr.msk.f32.mxu1 %vm50_vm0, %v160_v16  ;;  %v736_v21 = vpack.c.bf16 %v159_v20, %v158_v19  ;;  %v336_v22 = vld [vmem:[%s986_s7] sm:$0xff]  ;;  %v337_v23 = vld [vmem:[%s986_s7 + $0x8] sm:$0xff]  ;;  %v338_v24 = vld [vmem:[%s986_s7 + $0x10] sm:$0xff]  ;;  %v48_v33 = vsub.s32 0, %v47_v32  ;;  %v330_v63 = vsub.s32 1, %v47_v32  ;;  %v346_v9 = vsub.s32 2, %v47_v32 }
   0x9   :  { %723 = vmatpush3.bf16.msra.mxu0 %v720_v6  ;;  %727 = vmatpush3.bf16.msra.mxu1 %v724_v10  ;;  %v740_v25 = vpack.c.bf16 %v337_v23, %v336_v22  ;;  %v339_v26 = vld [vmem:[%s986_s7 + $0x18] sm:$0xff]  ;;  %v340_v28 = vld [vmem:[%s986_s7 + $0x20] sm:$0xff]  ;;  %v341_v29 = vld [vmem:[%s986_s7 + $0x28] sm:$0xff]  ;;  %s594_s29 = sshll.u32 %s804_s0, 4  ;;  %s595_s29 = int_to_ptr.vmem [resolvable:$true] %s594_s29 }
   0xa   :  { %729 = vmatprep.subr.bf16.mxu1 %v728_v13  ;;  %v744_v27 = vpack.c.bf16 %v339_v26, %v338_v24  ;;  %v748_v30 = vpack.c.bf16 %v341_v29, %v340_v28  ;;  %v39_v34 = vld [vmem:[%s987_s8] sm:$0xff]  ;;  %v151_v47 = vld [vmem:[%s982_s3 + $0x8] sm:$0xff]  ;;  %v342_v60 = vld [vmem:[%s986_s7 + $0x30] sm:$0xff]  ;;  %p782_p1 = scmp.lt.s32.totalorder %s595_s29, %s595_s29 }
   0xb   :  { %741 = vmatprep.subr.bf16.mxu0 %v740_v25  ;;  %v49_v35 = vrot.slane %v39_v34, %v48_v33  ;;  %v144_v50 = vld [vmem:[%s980_s1] sm:$0xff]  ;;  %v145_v53 = vld [vmem:[%s980_s1 + $0x8] sm:$0xff]  ;;  %v343_v61 = vld [vmem:[%s986_s7 + $0x38] sm:$0xff]  ;;  %v331_v0 = vrot.slane %v39_v34, %v330_v63  ;;  %v347_v10 = vrot.slane %v39_v34, %v346_v9 }
   0xc   :  { %659 = vmatmul.mubr.msk.f32.vlgmr.msra.gmra.mrb[0].mxu0 %vm50_vm0, %v41_v7  ;;  %v150_v51 = vld [vmem:[%s982_s3] sm:$0xff]  ;;  %v752_v62 = vpack.c.bf16 %v343_v61, %v342_v60  ;;  %v801_v7 = vmov 0.0|0.0   ;;  %vm761_vm4 = vmpackc.low %vm50_vm0, %vm50_vm0 }
   0xd   :  { %731 = vmatpush3.bf16.msra.mxu1 %v728_v13  ;;  %743 = vmatpush3.bf16.msra.mxu0 %v740_v25  ;;  %v430_v16 = vld [vmem:[%s988_s9] sm:$0xf]  ;;  %s777_s9 = scalar_lea.vmem %s595_s29, 64 }
   0xe   :  { %733 = vmatprep.subr.bf16.mxu1 %v732_v17  ;;  %745 = vmatprep.subr.bf16.mxu0 %v744_v27  ;;  %p778_p0 = scmp.ne.s32.totalorder %s595_s29, %s777_s9  ;;  %p783_p2 = scmp.lt.s32.totalorder %s777_s9, %s777_s9 }
  0x10   :  { %670 = vmatmul.mubr.msk.f32.vlgmr.msra.gmra.mrb[0].mxu1 %vm50_vm0, %v161_v18  ;;  %p784_p3 = por %p783_p2, %p782_p1 }
  0x11   :  { %735 = vmatpush3.bf16.msra.mxu1 %v732_v17  ;;  %747 = vmatpush3.bf16.msra.mxu0 %v744_v27  ;;  %v505_v17 = vld [vmem:[%s989_s10] sm:$0xf] }
  0x12   :  { %737 = vmatprep.subr.bf16.mxu1 %v736_v21  ;;  %749 = vmatprep.subr.bf16.mxu0 %v748_v30  ;;  %p785_p4 = pnand %p784_p3, %p778_p0 }
  0x15   :  { %739 = vmatpush3.bf16.msra.mxu1 %v736_v21  ;;  %751 = vmatpush3.bf16.msra.mxu0 %v748_v30 }
  0x16   :  { %753 = vmatprep.subr.bf16.mxu0 %v752_v62  ;;  %756 = vmatprep.subr.bf16.mxu1 %v801_v7 }
  0x19   :  { %755 = vmatpush3.bf16.msra.mxu0 %v752_v62 }
  0xdf   :  { %v660_v36 = vpop.f32.mrb[0].mxu0 }
  0xe0   :  { %v129_v37 = vadd.f32 %v660_v36, %v49_v35  ;;  %v123_v38 = vpop.f32.mrb[1].mxu0 }
  0xe1   :  { %v124_v39 = vadd.f32 %v123_v38, %v49_v35 }
  0xe2   :  { %v605_v40 = vmul.f32 -1.442695, %v129_v37 }
  0xe3   :  { %v604_v41 = vmul.f32 -1.442695, %v124_v39 }
  0xe4   :  { %769 = vpow2.f32 %v605_v40 }
  0xe5   :  { %771 = vpow2.f32 %v604_v41 }
  0xee   :  { %v770_v42 = vpop.eup %769 }
  0xef   :  { %v772_v43 = vpop.eup %771  ;;  %v139_v44 = vadd.f32 1.0, %v770_v42 }
  0xf0   :  { %v138_v45 = vadd.f32 1.0, %v772_v43 }
  0xf1   :  { %773 = vrcp.f32 %v139_v44 }
  0xf2   :  { %775 = vrcp.f32 %v138_v45 }
  0xfb   :  { %v774_v46 = vpop.eup %773 }
  0xfc   :  { %v776_v48 = vpop.eup %775  ;;  %v149_v49 = vsub.f32 1.0, %v774_v46  ;;  %v147_v57 = vmul.f32 %v774_v46, %v145_v53 }
  0xfd   :  { %v148_v52 = vsub.f32 1.0, %v776_v48  ;;  %v146_v55 = vmul.f32 %v776_v48, %v144_v50 }
  0xfe   :  { %v153_v54 = vmul.f32 %v151_v47, %v149_v49 }
  0xff   :  { %v152_v56 = vmul.f32 %v150_v51, %v148_v52 }
 0x100   :  { %v155_v59 = vadd.f32 %v153_v54, %v147_v57 }
 0x101   :  { %v154_v58 = vadd.f32 %v152_v56, %v146_v55 }
 0x103   :  { %680 = vmatprep.mubr.msk.f32.mxu1 %vm50_vm0, %v154_v58 }
 0x104   :  { %681 = vmatmul.mubr.msk.f32.vlgmr.msra.gmra.mrb[0].mxu1 %vm50_vm0, %v155_v59 }
 0x105   :  { %706 = vmatprep.mubr.msk.f32.mxu1 %vm802_vm2, %v803_v8 }
 0x1d7   :  { %v682_v1 = vpop.f32.mrb[0].mxu1 }
 0x1d8   :  { %v333_v2 = vadd.f32 %v682_v1, %v331_v0  ;;  %v319_v3 = vpop.f32.mrb[1].mxu1 }
 0x1d9   :  { %v332_v4 = vadd.f32 %v331_v0, %v319_v3 }
 0x1da   :  { %v335_v6 = vmax.f32 %v333_v2, 0.0 }
 0x1db   :  { %v334_v5 = vmax.f32 %v332_v4, 0.0 }
 0x1dd   :  { %699 = vmatprep.mubr.msk.f32.mxu0 %vm348_vm1, %v334_v5 }
 0x1de   :  { %700 = vmatmul.mubr.msk.f32.vlgmr.msra.gmra.mrb[2].mxu0 %vm348_vm1, %v335_v6 }
 0x2b1   :  { %v701_v11 = vpop.f32.mrb[2].mxu0 }
 0x2b2   :  { %v427_v12 = vadd.f32 %v701_v11, %v347_v10  ;;  %v421_v13 = vpop.f32.mrb[3].mxu0 }
 0x2b3   :  { %v422_v14 = vadd.f32 %v421_v13, %v347_v10 }
 0x2b5   :  { %v757_v15 = vpack.c.bf16 %v427_v12, %v422_v14 }
 0x2b7   :  { %758 = vmatpush3.bf16.msra.mxu1 %v757_v15 }
 0x2b8   :  { %759 = vmatprep.subr.bf16.mxu1 %v801_v7 }
 0x2ba   :  { %707 = vmatmul.mubr.msk.f32.vlgmr.msra.gmra.mrb[2].mxu1 %vm431_vm3, %v430_v16 }
 0x2bb   :  { %713 = vmatprep.mubr.msk.f32.mxu1 %vm802_vm2, %v803_v8 }
 0x2c0   :  { %762 = vmatpush3.bf16.xpose.msk.msra.mxu1 %vm761_vm4, %v757_v15 }
 0x38d   :  { %v501_v18 = vpop.f32.mrb[2].mxu1 }
 0x38e   :  { %v506_v19 = vmul.f32 %v505_v17, %v501_v18  ;;  %v708_v20 = vpop.f32.mrb[3].mxu1 }
 0x390   :  { %714 = vmatmul.mubr.msk.f32.vlgmr.msra.gmra.mrb[4].mxu1 %vm50_vm0, %v506_v19 }
 0x463   :  { %v582_v21 = vpop.f32.mrb[4].mxu1 }
 0x464   :  { %587 = vst.msk [vmem:[#allocation2] sm:$0xf] %vm586_vm5, %v582_v21  ;;  %v715_v22 = vpop.f32.mrb[5].mxu1 }
 0x465   :  { %788 = shalt.err (!%p785_p4)
}
 0x466   :  { %s789_s30 = scalar_lea.hbm %s990_s11, 64 }
 0x467   :  { %p790_p5 = scmp.ne.s32.totalorder %s990_s11, %s789_s30  ;;  %p793_p6 = scmp.lt.u32.totalorder %s789_s30, %s990_s11 }
 0x469   :  { %p795_p7 = pnand %p793_p6, %p790_p5 }
 0x46b   :  { %798 = shalt.err (!%p795_p7)
}
 0x46c   :  { %597 = dma.vmem_to_hbm [thread:$0]  %s595_s29, 64, %s990_s11, [#allocation3]  }
 0x46d   :  { %799 = dma.done.wait [#allocation3], 64  }
 0x46e   :  { %800 = vsyncadd [#allocation3], 4294967232 }
 0x46f   :  { %601 = vsyncpa [#allocation3], 1 }

// kernel: dimnet_forward.2
= control target key start
LH: loop header
LB: loop body
LE: loop exit
PB: predicated region body
PF: predicated region fallthrough
CT: control target
= control target key end

     0   :  { %s3854_s0 = inlined_call_operand.vmem [shape: f32[3,16,32], index: 0, kind: input, shape index: {}]   ;;  %s3855_s1 = inlined_call_operand.vmem [shape: f32[3,40,32], index: 1, kind: input, shape index: {}]   ;;  %s3856_s2 = inlined_call_operand.vmem [shape: f32[3,40,16], index: 2, kind: input, shape index: {}]   ;;  %s3857_s3 = inlined_call_operand.vmem [shape: f32[3,40,16], index: 3, kind: input, shape index: {}]   ;;  %s3858_s4 = inlined_call_operand.vmem [shape: f32[3,16,40], index: 4, kind: input, shape index: {}]   ;;  %s3859_s5 = inlined_call_operand.vmem [shape: f32[3,16,1], index: 5, kind: input, shape index: {}]   ;;  %s3860_s6 = inlined_call_operand.vmem [shape: f32[16,32], index: 6, kind: input, shape index: {}]   ;;  %s3861_s7 = inlined_call_operand.vmem [shape: f32[32,32], index: 7, kind: input, shape index: {}]   ;;  %s3862_s8 = inlined_call_operand.vmem [shape: f32[32,64], index: 8, kind: input, shape index: {}]   ;;  %s3863_s9 = inlined_call_operand.vmem [shape: f32[32,64], index: 9, kind: input, shape index: {}]   ;;  %s3864_s10 = inlined_call_operand.vmem [shape: f32[64,32], index: 10, kind: input, shape index: {}]   ;;  %s3865_s11 = inlined_call_operand.vmem [shape: f32[32,96], index: 11, kind: input, shape index: {}]   ;;  %s3866_s12 = inlined_call_operand.vmem [shape: f32[32,96], index: 12, kind: input, shape index: {}]   ;;  %s3867_s13 = inlined_call_operand.vmem [shape: f32[32,96], index: 13, kind: input, shape index: {}]   ;;  %s3868_s14 = inlined_call_operand.vmem [shape: f32[32,32], index: 14, kind: input, shape index: {}]   ;;  %s3869_s15 = inlined_call_operand.vmem [shape: f32[32,96], index: 15, kind: input, shape index: {}]   ;;  %s3870_s16 = inlined_call_operand.vmem [shape: f32[32,96], index: 16, kind: input, shape index: {}]   ;;  %s3871_s17 = inlined_call_operand.vmem [shape: f32[8,96], index: 17, kind: input, shape index: {}]   ;;  %s3872_s18 = inlined_call_operand.vmem [shape: f32[4,16], index: 18, kind: input, shape index: {}]   ;;  %s3873_s19 = inlined_call_operand.vmem [shape: f32[4,32], index: 19, kind: input, shape index: {}]   ;;  %s3874_s20 = inlined_call_operand.vmem [shape: f32[16,32], index: 20, kind: output, shape index: {0}]   ;;  %s3875_s21 = inlined_call_operand.vmem [shape: f32[16,32], index: 21, kind: output, shape index: {1}]   ;;  %s3876_s22 = inlined_call_operand.vmem [shape: f32[4,16], index: 22, kind: output, shape index: {2}]  }
   0x1   :  { %3884 = sst [smem:[#allocation6_spill]] %s3854_s0 }
   0x2   :  { %3885 = sst [smem:[#allocation7_spill]] %s3855_s1 }
   0x3   :  { %3886 = sst [smem:[#allocation8_spill]] %s3856_s2 }
   0x4   :  { %3887 = sst [smem:[#allocation9_spill]] %s3857_s3  ;;  %s3385_s3 = smov 0  }
   0x5   :  { %3888 = sst [smem:[#allocation10_spill]] %s3858_s4 }
   0x6   :  { %3889 = sst [smem:[#allocation11_spill]] %s3859_s5 }
   0x7   :  { %3890 = sst [smem:[#allocation12_spill]] %s3860_s6 }
   0x8   :  { %3891 = sst [smem:[#allocation13_spill]] %s3868_s14 }
   0x9   :  { %3892 = sst [smem:[#allocation14_spill]] %s3869_s15 }
   0xa   :  { %3893 = sst [smem:[#allocation15_spill]] %s3870_s16 }
   0xb   :  { %3894 = sst [smem:[#allocation16_spill]] %s3872_s18 }
   0xc   :  { %3895 = sst [smem:[#allocation17_spill]] %s3873_s19 }
   0xd   :  { %3896 = sst [smem:[#allocation18_spill]] %s3875_s21 }
   0xe   :  { %3897 = sst [smem:[#allocation19_spill]] %s3876_s22 }
   0xf LB: > { %3898 = sst [smem:[#allocation5_spill]] %s3259_s3  ;;  %s2655_s28 = sadd.s32 4294967295, %s3259_s3   ;;  %s3259_s3 = sphi %s3385_s3, %s33_s3  }
  0x10   : > { %p2658_p0 = scmp.ge.s32.totalorder %s3259_s3, 1  ;;  %p652_p1 = scmp.lt.s32.totalorder %s3259_s3, 4 }
  0x12   : > { %p653_p2 = pnand %p2658_p0, %p652_p1 }
  0x13   : > { %p734_p3 = scmp.lt.s32.totalorder (!%p653_p2), %s2655_s28, 2  ;;  %s3899_s1 = sld [smem:[#allocation6_spill]] (!%p653_p2) }
  0x14   : > { %656 = sbr.rel (%p653_p2) target bundleno = 2797 (0xaed), region = 100  ;;  %s3900_s25 = sld [smem:[#allocation10_spill]] (!%p653_p2) }
  0x15   : > { %s3901_s21 = sld [smem:[#allocation7_spill]] (!%p653_p2)  ;;  %s3902_s18 = sld [smem:[#allocation8_spill]] (!%p653_p2) }
  0x16   : > { %s3903_s0 = sld [smem:[#allocation9_spill]] (!%p653_p2)  ;;  %s3904_s24 = sld [smem:[#allocation11_spill]] (!%p653_p2) }
  0x17   : > { %p2668_p4 = scmp.ne.s32.totalorder (!%p653_p2), %s2655_s28, 0 }
  0x1b   : > { %s735_s29 = scalar_select %p734_p3, %s2655_s28, 2 }
  0x1c   : > { %767 = sbr.rel (%p2668_p4) target bundleno = 36 (0x24), region = 104  ;;  %s3905_s2 = sld [smem:[#allocation12_spill]] (!%p2668_p4)  ;;  %vm770_vm0 = vcmask (!%p2668_p4), 261120   ;;  %v3261_v2 = vmov (!%p2668_p4), 0.0  }
  0x1d   : > { %s2728_s30 = sshll.u32 %s735_s29, 4  ;;  %s3187_s4 = smul.u32 40, %s735_s29  ;;  %773 = vst.msk [vmem:[#allocation3] sm:$0xff] (!%p2668_p4), %vm770_vm0, %v3261_v2  ;;  %774 = vst.msk [vmem:[#allocation3 + $0x8] sm:$0xff] (!%p2668_p4), %vm770_vm0, %v3261_v2 }
  0x1e   : > { %s3396_s5 = scalar_lea.vmem %s3899_s1, %s2728_s30  ;;  %s3401_s26 = scalar_lea.vmem %s3900_s25, %s2728_s30  ;;  %775 = vst.msk [vmem:[#allocation4] sm:$0xff] (!%p2668_p4), %vm770_vm0, %v3261_v2  ;;  %776 = vst.msk [vmem:[#allocation4 + $0x8] sm:$0xff] (!%p2668_p4), %vm770_vm0, %v3261_v2 }
  0x1f   : > { %s3406_s3 = scalar_lea.vmem %s3901_s21, %s3187_s4  ;;  %s3411_s15 = scalar_lea.vmem %s3902_s18, %s3187_s4 }
  0x20   : > { %s3416_s23 = scalar_lea.vmem %s3903_s0, %s3187_s4  ;;  %s3421_s6 = scalar_lea.vmem %s3904_s24, %s2728_s30 }
  0x22   : > { %v768_v0 = vld [vmem:[%s3905_s2] sm:$0xff] (!%p2668_p4)  ;;  %v769_v1 = vld [vmem:[%s3905_s2 + $0x8] sm:$0xff] (!%p2668_p4) }
  0x23   : > { %771 = vst.msk [vmem:[#allocation2] sm:$0xff] %vm770_vm0, %v768_v0  ;;  %772 = vst.msk [vmem:[#allocation2 + $0x8] sm:$0xff] %vm770_vm0, %v769_v1 }
  0x24 PF: > { %v786_v3 = vld [vmem:[%s3861_s7] sm:$0xff]  ;;  %v787_v4 = vld [vmem:[%s3861_s7 + $0x8] sm:$0xff]  ;;  %v788_v5 = vld [vmem:[%s3861_s7 + $0x10] sm:$0xff]  ;;  %vm794_vm1 = vcmask 261120   ;;  %v790_v34 = vlaneseq  ;;  %s3906_s29 = sld [smem:[#allocation12_spill]]  ;;  %v3262_v2 = vmov 0.0|0.0  }
  0x25   : > { %v3074_v6 = vpack.c.bf16 %v787_v4, %v786_v3  ;;  %v789_v7 = vld [vmem:[%s3861_s7 + $0x18] sm:$0xff]  ;;  %v779_v8 = vld [vmem:[#allocation3] sm:$0xff]  ;;  %v902_v11 = vld [vmem:[%s3863_s9] sm:$0xff]  ;;  %vm3263_vm2 = vmmov 0   ;;  %v3264_v3 = vmov 0.0   ;;  %vm1088_vm3 = vcmask 523264  }
  0x26   : > { %v3078_v9 = vpack.c.bf16 %v789_v7, %v788_v5  ;;  %2847 = vmatprep.mubr.msk.f32.mxu0 %vm794_vm1, %v779_v8  ;;  %v780_v10 = vld [vmem:[#allocation3 + $0x8] sm:$0xff]  ;;  %v903_v12 = vld [vmem:[%s3863_s9 + $0x8] sm:$0xff]  ;;  %v904_v14 = vld [vmem:[%s3863_s9 + $0x10] sm:$0xff]  ;;  %v3489_v35 = vshrl.u32 %v790_v34, 7  ;;  %vm1175_vm4 = vcmask 130048   ;;  %vm1868_vm8 = vcmask 326656  }
  0x27   : > { %3075 = vmatprep.subr.bf16.mxu0 %v3074_v6  ;;  %v3082_v13 = vpack.c.bf16 %v903_v12, %v902_v11  ;;  %v905_v15 = vld [vmem:[%s3863_s9 + $0x18] sm:$0xff]  ;;  %v896_v17 = vld [vmem:[%s3862_s8] sm:$0xff]  ;;  %v897_v18 = vld [vmem:[%s3862_s8 + $0x8] sm:$0xff]  ;;  %s3910_s18 = sld [smem:[#allocation15_spill]]  ;;  %s3912_s19 = sld [smem:[#allocation16_spill]]  ;;  %vm2553_vm9 = vcmask 125952  }
  0x28   : > { %3077 = vmatpush3.bf16.msra.mxu0 %v3074_v6  ;;  %v3086_v16 = vpack.c.bf16 %v905_v15, %v904_v14  ;;  %v900_v19 = vld [vmem:[%s3396_s5] sm:$0xff]  ;;  %v3090_v20 = vpack.c.bf16 %v897_v18, %v896_v17  ;;  %v901_v21 = vld [vmem:[%s3396_s5 + $0x8] sm:$0xff]  ;;  %v898_v22 = vld [vmem:[%s3862_s8 + $0x10] sm:$0xff]  ;;  %v3492_v36 = vsub.s32 0, %v3489_v35  ;;  %v1070_v4 = vsub.s32 1, %v3489_v35  ;;  %s3269_s22 = smov 32  }
  0x29   : > { %3079 = vmatprep.subr.bf16.mxu0 %v3078_v9  ;;  %3083 = vmatprep.subr.bf16.mxu1 %v3082_v13  ;;  %v899_v23 = vld [vmem:[%s3862_s8 + $0x18] sm:$0xff]  ;;  %v1076_v25 = vld [vmem:[%s3864_s10] sm:$0xff]  ;;  %v1077_v26 = vld [vmem:[%s3864_s10 + $0x8] sm:$0xff]  ;;  %s3914_s30 = sld [smem:[#allocation19_spill]]  ;;  %s3915_s27 = sld [smem:[#allocation18_spill]] }
  0x2a   : > { %3085 = vmatpush3.bf16.msra.mxu1 %v3082_v13  ;;  %2858 = vmatprep.mubr.msk.f32.mxu1 %vm794_vm1, %v900_v19  ;;  %v3094_v24 = vpack.c.bf16 %v899_v23, %v898_v22  ;;  %v1078_v27 = vld [vmem:[%s3864_s10 + $0x10] sm:$0xff]  ;;  %v3098_v28 = vpack.c.bf16 %v1077_v26, %v1076_v25  ;;  %v1079_v29 = vld [vmem:[%s3864_s10 + $0x18] sm:$0xff]  ;;  %v1080_v31 = vld [vmem:[%s3864_s10 + $0x20] sm:$0xff] }
  0x2b   : > { %3087 = vmatprep.subr.bf16.mxu1 %v3086_v16  ;;  %v3102_v30 = vpack.c.bf16 %v1079_v29, %v1078_v27  ;;  %v1081_v32 = vld [vmem:[%s3864_s10 + $0x28] sm:$0xff]  ;;  %v3497_v37 = vld [vmem:[%s3871_s17] sm:$0xff]  ;;  %v1082_v63 = vld [vmem:[%s3864_s10 + $0x30] sm:$0xff] }
  0x2c   : > { %3081 = vmatpush3.bf16.msra.mxu0 %v3078_v9  ;;  %v3106_v33 = vpack.c.bf16 %v1081_v32, %v1080_v31  ;;  %v793_v38 = vrot.slane %v3497_v37, %v3492_v36  ;;  %v784_v50 = vld [vmem:[%s3906_s29 + $0x8] sm:$0xff]  ;;  %v777_v53 = vld [vmem:[#allocation2] sm:$0xff]  ;;  %v1083_v0 = vld [vmem:[%s3864_s10 + $0x38] sm:$0xff]  ;;  %v1071_v5 = vrot.slane %v3497_v37, %v1070_v4 }
  0x2d   : > { %3099 = vmatprep.subr.bf16.mxu0 %v3098_v28  ;;  %v783_v54 = vld [vmem:[%s3906_s29] sm:$0xff]  ;;  %v778_v56 = vld [vmem:[#allocation2 + $0x8] sm:$0xff]  ;;  %v3110_v1 = vpack.c.bf16 %v1083_v0, %v1082_v63  ;;  %v1283_v15 = vld [vmem:[%s3411_s15 + $0x10] sm:$0xff]  ;;  %s3909_s29 = sld [smem:[#allocation13_spill]] }
  0x2e   : > { %3089 = vmatpush3.bf16.msra.mxu1 %v3086_v16  ;;  %v3118_v11 = vpack.c.bf16 %v778_v56, %v777_v53  ;;  %v1281_v13 = vld [vmem:[%s3411_s15] sm:$0xff]  ;;  %v1282_v14 = vld [vmem:[%s3411_s15 + $0x8] sm:$0xff]  ;;  %v1284_v16 = vld [vmem:[%s3411_s15 + $0x18] sm:$0xff] }
  0x2f   : > { %2848 = vmatmul.mubr.msk.f32.vlgmr.msra.gmra.mrb[0].mxu0 %vm794_vm1, %v780_v10  ;;  %3091 = vmatprep.subr.bf16.mxu1 %v3090_v20  ;;  %v1285_v17 = vld [vmem:[%s3411_s15 + $0x20] sm:$0xff]  ;;  %v1392_v19 = vld [vmem:[%s3865_s11 + $0x8] sm:$0xff]  ;;  %v1394_v22 = vld [vmem:[%s3865_s11 + $0x18] sm:$0xff]  ;;  %s3911_s15 = sld [smem:[#allocation14_spill]] }
  0x30   : > { %3101 = vmatpush3.bf16.msra.mxu0 %v3098_v28  ;;  %v1391_v18 = vld [vmem:[%s3865_s11] sm:$0xff]  ;;  %v1396_v31 = vld [vmem:[%s3866_s12 + $0x8] sm:$0xff]  ;;  %v1611_v63 = vld [vmem:[%s3406_s3 + $0x10] sm:$0xff] }
  0x31   : > { %2859 = vmatmul.mubr.msk.f32.vlgmr.msra.gmra.mrb[0].mxu1 %vm794_vm1, %v901_v21  ;;  %3103 = vmatprep.subr.bf16.mxu0 %v3102_v30  ;;  %v1393_v21 = vld [vmem:[%s3865_s11 + $0x10] sm:$0xff]  ;;  %v1612_v0 = vld [vmem:[%s3406_s3 + $0x18] sm:$0xff]  ;;  %vm3682_vm5 = vmpackc.low %vm794_vm1, %vm794_vm1 }
  0x32   : > { %3093 = vmatpush3.bf16.msra.mxu1 %v3090_v20  ;;  %v3127_v20 = vpack.c.bf16 %v1392_v19, %v1391_v18  ;;  %v3130_v23 = vpack.c.bf16 %v1394_v22, %v1393_v21 }
  0x33   : > { %3095 = vmatprep.subr.bf16.mxu1 %v3094_v24 }
  0x34   : > { %3105 = vmatpush3.bf16.msra.mxu0 %v3102_v30  ;;  %v1395_v30 = vld [vmem:[%s3866_s12] sm:$0xff] }
  0x35   : > { %3107 = vmatprep.subr.bf16.mxu0 %v3106_v33 }
  0x36   : > { %3097 = vmatpush3.bf16.msra.mxu1 %v3094_v24  ;;  %v1086_v24 = vsub.s32 2, %v3489_v35 }
  0x37   : > { %3114 = vmatprep.subr.bf16.mxu1 %v3262_v2 }
  0x38   : > { %3109 = vmatpush3.bf16.msra.mxu0 %v3106_v33  ;;  %v1087_v25 = vrot.slane %v3497_v37, %v1086_v24 }
  0x39   : > { %3111 = vmatprep.subr.bf16.mxu0 %v3110_v1 }
  0x3c   : > { %3113 = vmatpush3.bf16.msra.mxu0 %v3110_v1  ;;  %v1613_v1 = vld [vmem:[%s3406_s3 + $0x20] sm:$0xff] }
  0x3d   : > { %3117 = vmatprep.subr.bf16.mxu0 %v3262_v2 }
 0x102   : > { %v2849_v39 = vpop.f32.mrb[0].mxu0 }
 0x103   : > { %v873_v40 = vadd.f32 %v2849_v39, %v793_v38  ;;  %v867_v41 = vpop.f32.mrb[1].mxu0  ;;  %v3121_v39 = vpack.c.bf16 %v1396_v31, %v1395_v30 }
 0x104   : > { %v868_v42 = vadd.f32 %v867_v41, %v793_v38  ;;  %v1170_v38 = vld [vmem:[%s3416_s23] sm:$0xff]  ;;  %v1398_v41 = vld [vmem:[%s3866_s12 + $0x18] sm:$0xff] }
 0x105   : > { %v2672_v43 = vmul.f32 -1.442695, %v873_v40  ;;  %v1397_v40 = vld [vmem:[%s3866_s12 + $0x10] sm:$0xff] }
 0x106   : > { %v2671_v44 = vmul.f32 -1.442695, %v868_v42 }
 0x107   : > { %3217 = vpow2.f32 %v2672_v43 }
 0x108   : > { %3219 = vpow2.f32 %v2671_v44  ;;  %v1171_v44 = vld [vmem:[%s3416_s23 + $0x8] sm:$0xff] }
 0x111   : > { %v3218_v45 = vpop.eup %3217 }
 0x112   : > { %v3220_v46 = vpop.eup %3219  ;;  %v883_v47 = vadd.f32 1.0, %v3218_v45  ;;  %v3124_v45 = vpack.c.bf16 %v1398_v41, %v1397_v40 }
 0x113   : > { %v882_v48 = vadd.f32 1.0, %v3220_v46 }
 0x114   : > { %3221 = vrcp.f32 %v883_v47 }
 0x115   : > { %3223 = vrcp.f32 %v882_v48  ;;  %v1172_v48 = vld [vmem:[%s3416_s23 + $0x10] sm:$0xff] }
 0x11e   : > { %v3222_v49 = vpop.eup %3221 }
 0x11f   : > { %v3224_v51 = vpop.eup %3223  ;;  %v891_v52 = vsub.f32 1.0, %v3222_v49  ;;  %v889_v60 = vmul.f32 %v3222_v49, %v778_v56  ;;  %v1173_v49 = vld [vmem:[%s3416_s23 + $0x18] sm:$0xff] }
 0x120   : > { %v890_v55 = vsub.f32 1.0, %v3224_v51  ;;  %v888_v58 = vmul.f32 %v3224_v51, %v777_v53  ;;  %v1614_v51 = vld [vmem:[%s3867_s13] sm:$0xff] }
 0x121   : > { %v893_v57 = vmul.f32 %v891_v52, %v784_v50  ;;  %v1174_v50 = vld [vmem:[%s3416_s23 + $0x20] sm:$0xff]  ;;  %v1615_v52 = vld [vmem:[%s3867_s13 + $0x8] sm:$0xff] }
 0x122   : > { %v892_v59 = vmul.f32 %v890_v55, %v783_v54  ;;  %v3133_v53 = vpack.c.bf16 %v1615_v52, %v1614_v51  ;;  %v1616_v54 = vld [vmem:[%s3867_s13 + $0x10] sm:$0xff]  ;;  %v1617_v55 = vld [vmem:[%s3867_s13 + $0x18] sm:$0xff] }
 0x123   : > { %v895_v62 = vadd.f32 %v893_v57, %v889_v60  ;;  %v3136_v56 = vpack.c.bf16 %v1617_v55, %v1616_v54 }
 0x124   : > { %v894_v61 = vadd.f32 %v892_v59, %v888_v58 }
 0x126   : > { %2869 = vmatprep.mubr.msk.f32.mxu1 %vm794_vm1, %v894_v61  ;;  %v1609_v61 = vld [vmem:[%s3406_s3] sm:$0xff] }
 0x127   : > { %2870 = vmatmul.mubr.msk.f32.vlgmr.msra.gmra.mrb[0].mxu1 %vm794_vm1, %v895_v62  ;;  %v1610_v62 = vld [vmem:[%s3406_s3 + $0x8] sm:$0xff]  ;;  %s3265_s3 = smov 96  }
 0x128   : > { %2895 = vmatprep.mubr.msk.f32.mxu1 %vm3263_vm2, %v3264_v3 }
 0x1fa   : > { %v2871_v6 = vpop.f32.mrb[0].mxu1 }
 0x1fb   : > { %v1073_v7 = vadd.f32 %v2871_v6, %v1071_v5  ;;  %v1059_v8 = vpop.f32.mrb[1].mxu1 }
 0x1fc   : > { %v1072_v9 = vadd.f32 %v1071_v5, %v1059_v8 }
 0x1fd   : > { %v1075_v12 = vmax.f32 %v1073_v7, 0.0 }
 0x1fe   : > { %v1074_v10 = vmax.f32 %v1072_v9, 0.0 }
 0x200   : > { %2888 = vmatprep.mubr.msk.f32.mxu0 %vm1088_vm3, %v1074_v10 }
 0x201   : > { %2889 = vmatmul.mubr.msk.f32.vlgmr.msra.gmra.mrb[2].mxu0 %vm1088_vm3, %v1075_v12 }
 0x202   : > { %3119 = vmatpush3.bf16.msra.mxu0 %v3118_v11  ;;  %2914 = vmatprep.mubr.msk.f32.mxu0 %vm3263_vm2, %v3264_v3 }
 0x203   : > { %3126 = vmatprep.subr.bf16.mxu0 %v3262_v2 }
 0x205   : > { %2915 = vmatmul.mubr.msk.f32.vlgmr.msra.gmra.mrb[4].mxu0 %vm1175_vm4, %v1281_v13 }
 0x206   : > { %2917 = vmatprep.mubr.msk.f32.mxu0 %vm3263_vm2, %v3264_v3  ;;  %3128 = vmatpush3.bf16.msra.mxu0 %v3127_v20 }
 0x207   : > { %3129 = vmatprep.subr.bf16.mxu0 %v3262_v2 }
 0x209   : > { %2918 = vmatmul.mubr.msk.f32.gmra.mrb[6].mxu0 %vm1175_vm4, %v1282_v14 }
 0x20a   : > { %2920 = vmatprep.mubr.msk.f32.mxu0 %vm3263_vm2, %v3264_v3  ;;  %3131 = vmatpush3.bf16.msra.mxu0 %v3130_v23 }
 0x20b   : > { %3138 = vmatprep.subr.bf16.mxu0 %v3262_v2 }
 0x20d   : > { %2921 = vmatmul.mubr.msk.f32.gmra.mrb[8].mxu0 %vm1175_vm4, %v1283_v15 }
 0x20e   : > { %2923 = vmatprep.mubr.msk.f32.mxu0 %vm3263_vm2, %v3264_v3 }
 0x211   : > { %2924 = vmatmul.mubr.msk.f32.gmra.mrb[10].mxu0 %vm1175_vm4, %v1284_v16 }
 0x212   : > { %2926 = vmatprep.mubr.msk.f32.mxu0 %vm3263_vm2, %v3264_v3 }
 0x215   : > { %2927 = vmatmul.mubr.msk.f32.gmra.mrb[12].mxu0 %vm1175_vm4, %v1285_v17 }
 0x216   : > { %2960 = vmatprep.mubr.msk.f32.mxu0 %vm3263_vm2, %v3264_v3 }
 0x2d4   : > { %v2890_v26 = vpop.f32.mrb[2].mxu0 }
 0x2d5   : > { %v1167_v27 = vadd.f32 %v2890_v26, %v1087_v25  ;;  %v1161_v28 = vpop.f32.mrb[3].mxu0 }
 0x2d6   : > { %v1162_v29 = vadd.f32 %v1161_v28, %v1087_v25 }
 0x2d7   : > { %2381 = vst.msk [vmem:[#allocation2 + $0x8] sm:$0xff] %vm794_vm1, %v1167_v27  ;;  %2395 = vst.msk [vmem:[%s3874_s20 + $0x8] sm:$0xff] %vm794_vm1, %v1167_v27 }
 0x2d8   : > { %v3571_v32 = vpack.c.bf16 %v1167_v27, %v1162_v29  ;;  %2380 = vst.msk [vmem:[#allocation2] sm:$0xff] %vm794_vm1, %v1162_v29  ;;  %2394 = vst.msk [vmem:[%s3874_s20] sm:$0xff] %vm794_vm1, %v1162_v29  ;;  %v1367_v33 = vpop.f32.mrb[4].mxu0 }
 0x2d9   : > { %v2916_v34 = vpop.f32.mrb[5].mxu0 }
 0x2da   : > { %3116 = vmatpush3.bf16.msra.mxu1 %v3571_v32 }
 0x2db   : > { %3120 = vmatprep.subr.bf16.mxu1 %v3262_v2 }
 0x2dc   : > { %v1372_v42 = vpop.f32.mrb[6].mxu0 }
 0x2dd   : > { %2896 = vmatmul.mubr.msk.f32.vlgmr.msra.gmra.mrb[2].mxu1 %vm1175_vm4, %v1170_v38  ;;  %v2919_v43 = vpop.f32.mrb[7].mxu0  ;;  %v1730_v38 = vsub.s32 3, %v3489_v35 }
 0x2de   : > { %2898 = vmatprep.mubr.msk.f32.mxu1 %vm3263_vm2, %v3264_v3  ;;  %3122 = vmatpush3.bf16.msra.mxu1 %v3121_v39 }
 0x2df   : > { %3123 = vmatprep.subr.bf16.mxu1 %v3262_v2 }
 0x2e0   : > { %v1377_v46 = vpop.f32.mrb[8].mxu0 }
 0x2e1   : > { %2899 = vmatmul.mubr.msk.f32.gmra.mrb[4].mxu1 %vm1175_vm4, %v1171_v44  ;;  %v2922_v47 = vpop.f32.mrb[9].mxu0 }
 0x2e2   : > { %2901 = vmatprep.mubr.msk.f32.mxu1 %vm3263_vm2, %v3264_v3  ;;  %3125 = vmatpush3.bf16.msra.mxu1 %v3124_v45 }
 0x2e3   : > { %3132 = vmatprep.subr.bf16.mxu1 %v3262_v2 }
 0x2e4   : > { %v1382_v57 = vpop.f32.mrb[10].mxu0 }
 0x2e5   : > { %2902 = vmatmul.mubr.msk.f32.gmra.mrb[6].mxu1 %vm1175_vm4, %v1172_v48  ;;  %v2925_v58 = vpop.f32.mrb[11].mxu0 }
 0x2e6   : > { %2904 = vmatprep.mubr.msk.f32.mxu1 %vm3263_vm2, %v3264_v3 }
 0x2e8   : > { %v1387_v59 = vpop.f32.mrb[12].mxu0 }
 0x2e9   : > { %2905 = vmatmul.mubr.msk.f32.gmra.mrb[8].mxu1 %vm1175_vm4, %v1173_v49  ;;  %v2928_v60 = vpop.f32.mrb[13].mxu0 }
 0x2ea   : > { %2907 = vmatprep.mubr.msk.f32.mxu1 %vm3263_vm2, %v3264_v3 }
 0x2ed   : > { %2908 = vmatmul.mubr.msk.f32.gmra.mrb[10].mxu1 %vm1175_vm4, %v1174_v50 }
 0x2ee   : > { %2937 = vmatprep.mubr.msk.f32.mxu1 %vm3263_vm2, %v3264_v3 }
 0x2f1   : > { %2938 = vmatmul.mubr.msk.f32.vlgmr.msra.gmra.mrb[12].mxu1 %vm794_vm1, %v1367_v33 }
 0x2f2   : > { %2940 = vmatprep.mubr.msk.f32.mxu1 %vm3263_vm2, %v3264_v3  ;;  %3134 = vmatpush3.bf16.msra.mxu1 %v3133_v53 }
 0x2f3   : > { %3135 = vmatprep.subr.bf16.mxu1 %v3262_v2 }
 0x2f5   : > { %2941 = vmatmul.mubr.msk.f32.gmra.mrb[14].mxu1 %vm794_vm1, %v1372_v42  ;;  %v1731_v42 = vrot.slane %v3497_v37, %v1730_v38 }
 0x2f6   : > { %2943 = vmatprep.mubr.msk.f32.mxu1 %vm3263_vm2, %v3264_v3  ;;  %3137 = vmatpush3.bf16.msra.mxu1 %v3136_v56 }
 0x2f9   : > { %2944 = vmatmul.mubr.msk.f32.gmra.mrb[16].mxu1 %vm794_vm1, %v1377_v46 }
 0x2fa   : > { %2946 = vmatprep.mubr.msk.f32.mxu1 %vm3263_vm2, %v3264_v3 }
 0x2fd   : > { %2947 = vmatmul.mubr.msk.f32.gmra.mrb[18].mxu1 %vm794_vm1, %v1382_v57 }
 0x2fe   : > { %2949 = vmatprep.mubr.msk.f32.mxu1 %vm3263_vm2, %v3264_v3 }
 0x301   : > { %2950 = vmatmul.mubr.msk.f32.gmra.mrb[20].mxu1 %vm794_vm1, %v1387_v59 }
 0x302   : > { %2983 = vmatprep.mubr.msk.f32.mxu1 %vm3263_vm2, %v3264_v3 }
 0x305   : > { %2984 = vmatmul.mubr.msk.f32.vlgmr.msra.gmra.mrb[22].mxu1 %vm794_vm1, %v1609_v61 }
 0x306   : > { %2986 = vmatprep.mubr.msk.f32.mxu1 %vm3263_vm2, %v3264_v3 }
 0x309   : > { %2987 = vmatmul.mubr.msk.f32.gmra.mrb[24].mxu1 %vm794_vm1, %v1610_v62 }
 0x30a   : > { %2989 = vmatprep.mubr.msk.f32.mxu1 %vm3263_vm2, %v3264_v3 }
 0x30d   : > { %2990 = vmatmul.mubr.msk.f32.gmra.mrb[26].mxu1 %vm794_vm1, %v1611_v63 }
 0x30e   : > { %2992 = vmatprep.mubr.msk.f32.mxu1 %vm3263_vm2, %v3264_v3 }
 0x311   : > { %2993 = vmatmul.mubr.msk.f32.gmra.mrb[28].mxu1 %vm794_vm1, %v1612_v0 }
 0x312   : > { %2995 = vmatprep.mubr.msk.f32.mxu1 %vm3263_vm2, %v3264_v3 }
 0x315   : > { %2996 = vmatmul.mubr.msk.f32.gmra.mrb[30].mxu1 %vm794_vm1, %v1613_v1 }
 0x3b0   : > { %v1257_v4 = vpop.f32.mrb[2].mxu1 }
 0x3b1   : > { %v2897_v5 = vpop.f32.mrb[3].mxu1  ;;  %2961 = vmatmul.mubr.msk.f32.vlgmr.msra.gmra.mrb[14].mxu0 %vm794_vm1, %v1257_v4 }
 0x3b2   : > { %2963 = vmatprep.mubr.msk.f32.mxu0 %vm3263_vm2, %v3264_v3 }
 0x3b4   : > { %v1262_v6 = vpop.f32.mrb[4].mxu1 }
 0x3b5   : > { %v2900_v7 = vpop.f32.mrb[5].mxu1  ;;  %2964 = vmatmul.mubr.msk.f32.gmra.mrb[16].mxu0 %vm794_vm1, %v1262_v6 }
 0x3b6   : > { %2966 = vmatprep.mubr.msk.f32.mxu0 %vm3263_vm2, %v3264_v3 }
 0x3b8   : > { %v1267_v8 = vpop.f32.mrb[6].mxu1 }
 0x3b9   : > { %v2903_v9 = vpop.f32.mrb[7].mxu1  ;;  %2967 = vmatmul.mubr.msk.f32.gmra.mrb[18].mxu0 %vm794_vm1, %v1267_v8 }
 0x3ba   : > { %2969 = vmatprep.mubr.msk.f32.mxu0 %vm3263_vm2, %v3264_v3 }
 0x3bc   : > { %v1272_v10 = vpop.f32.mrb[8].mxu1 }
 0x3bd   : > { %v2906_v11 = vpop.f32.mrb[9].mxu1  ;;  %2970 = vmatmul.mubr.msk.f32.gmra.mrb[20].mxu0 %vm794_vm1, %v1272_v10 }
 0x3be   : > { %2972 = vmatprep.mubr.msk.f32.mxu0 %vm3263_vm2, %v3264_v3 }
 0x3c0   : > { %v1277_v12 = vpop.f32.mrb[10].mxu1 }
 0x3c1   : > { %2973 = vmatmul.mubr.msk.f32.gmra.mrb[22].mxu0 %vm794_vm1, %v1277_v12  ;;  %v2909_v13 = vpop.f32.mrb[11].mxu1 }
 0x3c2   : > { %3008 = vmatprep.mubr.msk.f32.mxu0 %vm3263_vm2, %v3264_v3 }
 0x3c4   : > { %v1480_v14 = vpop.f32.mrb[12].mxu1 }
 0x3c5   : > { %v2939_v15 = vpop.f32.mrb[13].mxu1 }
 0x3c8   : > { %v1485_v16 = vpop.f32.mrb[14].mxu1 }
 0x3c9   : > { %v2942_v17 = vpop.f32.mrb[15].mxu1 }
 0x3ca   : > { %v3695_v17 = vld [vmem:[%s3401_s26 + $0x8] sm:$0xff] }
 0x3cb   : > { %vm1854_vm6 = vcmp.gt.f32.partialorder %v3695_v17, 0.5 }
 0x3cc   : > { %v1490_v18 = vpop.f32.mrb[16].mxu1 }
 0x3cd   : > { %v2945_v19 = vpop.f32.mrb[17].mxu1 }
 0x3d0   : > { %v1495_v20 = vpop.f32.mrb[18].mxu1 }
 0x3d1   : > { %v2948_v21 = vpop.f32.mrb[19].mxu1 }
 0x3d4   : > { %v1500_v22 = vpop.f32.mrb[20].mxu1 }
 0x3d5   : > { %v2951_v23 = vpop.f32.mrb[21].mxu1 }
 0x3d8   : > { %v1699_v24 = vpop.f32.mrb[22].mxu1 }
 0x3d9   : > { %v2985_v25 = vpop.f32.mrb[23].mxu1 }
 0x3dc   : > { %v1704_v26 = vpop.f32.mrb[24].mxu1 }
 0x3dd   : > { %v2988_v27 = vpop.f32.mrb[25].mxu1 }
 0x3e0   : > { %v1709_v28 = vpop.f32.mrb[26].mxu1 }
 0x3e1   : > { %v2991_v29 = vpop.f32.mrb[27].mxu1 }
 0x3e4   : > { %v1714_v30 = vpop.f32.mrb[28].mxu1 }
 0x3e5   : > { %v2994_v31 = vpop.f32.mrb[29].mxu1 }
 0x3e8   : > { %v1719_v33 = vpop.f32.mrb[30].mxu1 }
 0x3e9   : > { %v2997_v34 = vpop.f32.mrb[31].mxu1 }
 0x484   : > { %v1585_v39 = vpop.f32.mrb[14].mxu0 }
 0x485   : > { %v1586_v40 = vadd.f32 %v1585_v39, %v1480_v14  ;;  %v2962_v41 = vpop.f32.mrb[15].mxu0 }
 0x487   : > { %v1723_v43 = vadd.f32 %v1699_v24, %v1586_v40 }
 0x488   : > { %v1590_v44 = vpop.f32.mrb[16].mxu0 }
 0x489   : > { %v3671_v45 = vadd.f32 %v1731_v42, %v1723_v43  ;;  %v1591_v46 = vadd.f32 %v1590_v44, %v1485_v16  ;;  %v2965_v47 = vpop.f32.mrb[17].mxu0  ;;  %v3266_v16 = vmov 1.0  }
 0x48b   : > { %v1724_v48 = vadd.f32 %v1704_v26, %v1591_v46  ;;  %1742 = vrot.lane.b32.xlu0 %v3671_v45, %s3265_s3 }
 0x48c   : > { %v1595_v49 = vpop.f32.mrb[18].mxu0 }
 0x48d   : > { %v1733_v50 = vadd.f32 %v1731_v42, %v1724_v48  ;;  %v1596_v51 = vadd.f32 %v1595_v49, %v1490_v18  ;;  %v2968_v52 = vpop.f32.mrb[19].mxu0  ;;  %v3698_v18 = vld [vmem:[%s3401_s26] sm:$0xff]  ;;  %s3267_s26 = smov 64  }
 0x48e   : > { %vm1853_vm7 = vcmp.gt.f32.partialorder %v3698_v18, 0.5 }
 0x48f   : > { %v1725_v53 = vadd.f32 %v1709_v28, %v1596_v51  ;;  %1744 = vrot.lane.b32.xlu0 %v1733_v50, %s3265_s3  ;;  %v3205_v28 = vpack.i.bf16 %v1733_v50, %v3671_v45 }
 0x490   : > { %v1600_v54 = vpop.f32.mrb[20].mxu0 }
 0x491   : > { %v1734_v55 = vadd.f32 %v1731_v42, %v1725_v53  ;;  %v1601_v56 = vadd.f32 %v1600_v54, %v1495_v20  ;;  %v2971_v57 = vpop.f32.mrb[21].mxu0  ;;  %v3268_v54 = vmov 0  }
 0x492   : > { %3216 = vset.pattern.permute.xlu1 %v3268_v54  ;;  %3215 = vset.pattern.permute.xlu0 %v3268_v54  ;;  %v2061_v57 = vld [vmem:[%s3909_s29 + $0x10] sm:$0xff] }
 0x493   : > { %v1726_v58 = vadd.f32 %v1714_v30, %v1601_v56  ;;  %1746 = vrot.lane.b32.xlu1 %v1734_v55, %s3265_s3  ;;  %v2060_v56 = vld [vmem:[%s3909_s29 + $0x8] sm:$0xff] }
 0x494   : > { %v1605_v59 = vpop.f32.mrb[22].mxu0 }
 0x495   : > { %v1735_v60 = vadd.f32 %v1731_v42, %v1726_v58  ;;  %v1606_v61 = vadd.f32 %v1605_v59, %v1500_v22  ;;  %v2974_v62 = vpop.f32.mrb[23].mxu0  ;;  %v2062_v59 = vld [vmem:[%s3909_s29 + $0x18] sm:$0xff] }
 0x497   : > { %v1727_v63 = vadd.f32 %v1719_v33, %v1606_v61  ;;  %1748 = vrot.lane.b32.xlu1 %v1735_v60, %s3265_s3  ;;  %v3210_v27 = vpack.i.bf16 %v1735_v60, %v1734_v55 }
 0x499   : > { %v1736_v0 = vadd.f32 %v1731_v42, %v1727_v63 }
 0x49b   : > { %1750 = vrot.lane.b32.xlu0 %v1736_v0, %s3265_s3 }
 0x4fd   : > { %v1743_v1 = vpop.permute.xlu0 %1742 }
 0x4fe   : > { %v1757_v5 = vmul.f32 %v1743_v1, %v3671_v45  ;;  %v3737_v1 = vld [vmem:[%s3421_s6 + $0x8] sm:$0xff] }
 0x501   : > { %v1745_v4 = vpop.permute.xlu0 %1744 }
 0x502   : > { %v1758_v6 = vmul.f32 %v1745_v4, %v1733_v50  ;;  %v3740_v4 = vld [vmem:[%s3421_s6] sm:$0xff]  ;;  %s3913_s6 = sld [smem:[#allocation17_spill]] }
 0x504   : > { %v3139_v8 = vpack.c.bf16 %v1758_v6, %v1757_v5 }
 0x505   : > { %v1747_v9 = vpop.permute.xlu1 %1746 }
 0x506   : > { %3141 = vmatpush3.bf16.xpose.msk.msra.mxu0 %vm3682_vm5, %v3139_v8  ;;  %v1759_v11 = vmul.f32 %v1747_v9, %v1734_v55  ;;  %v2059_v55 = vld [vmem:[%s3909_s29] sm:$0xff] }
 0x507   : > { %3142 = vmatprep.subr.bf16.mxu0 %v3262_v2  ;;  %v3154_v58 = vpack.c.bf16 %v2060_v56, %v2059_v55 }
 0x509   : > { %v1749_v10 = vpop.permute.xlu1 %1748  ;;  %3155 = vmatprep.subr.bf16.mxu1 %v3154_v58 }
 0x50a   : > { %v1760_v12 = vmul.f32 %v1749_v10, %v1735_v60  ;;  %v3158_v60 = vpack.c.bf16 %v2062_v59, %v2061_v57  ;;  %3157 = vmatpush3.bf16.msra.mxu1 %v3154_v58  ;;  %v2233_v10 = vld [vmem:[%s3910_s18] sm:$0xff]  ;;  %v2150_v57 = vsub.s32 4, %v3489_v35 }
 0x50c   : > { %v3143_v13 = vpack.c.bf16 %v1760_v12, %v1759_v11  ;;  %3159 = vmatprep.subr.bf16.mxu1 %v3158_v60  ;;  %v2234_v11 = vld [vmem:[%s3910_s18 + $0x8] sm:$0xff]  ;;  %v2151_v58 = vrot.slane %v3497_v37, %v2150_v57 }
 0x50d   : > { %v1751_v14 = vpop.permute.xlu0 %1750  ;;  %v3170_v12 = vpack.c.bf16 %v2234_v11, %v2233_v10 }
 0x50e   : > { %3145 = vmatpush3.bf16.xpose.msk.msra.mxu0 %vm3682_vm5, %v3143_v13  ;;  %v1761_v15 = vmul.f32 %v1751_v14, %v1736_v0  ;;  %3161 = vmatpush3.bf16.msra.mxu1 %v3158_v60 }
 0x50f   : > { %3006 = vmatprep.subr.mxu0 %v3264_v3  ;;  %3171 = vmatprep.subr.bf16.mxu1 %v3170_v12 }
 0x516   : > { %3007 = vmatpush3.xpose.msk.msra.mxu0 %vm794_vm1, %v1761_v15 }
 0x519   : > { %3009 = vmatmul.mubr.msk.f32.vlgmr.msra.gmra.mrb[24].mxu0 %vm794_vm1, %v3266_v16 }
 0x5ec   : > { %v1846_v19 = vpop.f32.mrb[24].mxu0 }
 0x5ed   : > { %v3700_v20 = vmul.f32 0.17677669, %v1846_v19  ;;  %v3010_v21 = vpop.f32.mrb[25].mxu0 }
 0x5ef   : > { %v1858_v22 = vrot.slane %v3700_v20, %v3492_v36  ;;  %v1861_v13 = vsub.f32 0.0, %v3700_v20  ;;  %v2144_v20 = vld [vmem:[%s3911_s15] sm:$0xff] }
 0x5f1   : > { %v1860_v23 = vsel %vm1854_vm6, %v1858_v22, -1e+30  ;;  %v1859_v24 = vsel %vm1853_vm7, %v1858_v22, -1e+30  ;;  %v1865_v14 = vrot.slane %v1861_v13, %v3492_v36  ;;  %v2145_v36 = vld [vmem:[%s3911_s15 + $0x8] sm:$0xff] }
 0x5f2   : > { %v1872_v25 = vsel %vm1868_vm8, %v1860_v23, -inf  ;;  %v1869_v26 = vsel %vm1868_vm8, %v1859_v24, -inf }
 0x5f3   : > { %1873 = vmax.xlane.f32.xlu0 %v1872_v25  ;;  %1870 = vmax.xlane.f32.xlu1 %v1869_v26  ;;  %v1867_v15 = vsel %vm1854_vm6, %v1865_v14, -1e+30  ;;  %v1866_v19 = vsel %vm1853_vm7, %v1865_v14, -1e+30  ;;  %v3162_v25 = vpack.c.bf16 %v2145_v36, %v2144_v20  ;;  %v2147_v26 = vld [vmem:[%s3911_s15 + $0x18] sm:$0xff] }
 0x5f4   : > { %v1878_v16 = vsel %vm1868_vm8, %v1867_v15, -inf  ;;  %v1875_v21 = vsel %vm1868_vm8, %v1866_v19, -inf }
 0x604   : > { %3211 = vrot.lane.b32.xlu1 %v3210_v27, %s3267_s26 }
 0x608   : > { %1921 = vrot.lane.b32.xlu1 %v1736_v0, %s3267_s26 }
 0x609   : > { %3206 = vrot.lane.b32.xlu0 %v3205_v28, %s3267_s26 }
 0x680   : > { %v1874_v29 = vpop.xlane.xlu0 %1873  ;;  %v1871_v30 = vpop.xlane.xlu1 %1870 }
 0x681   : > { %v1882_v31 = vsub.f32 %v1860_v23, %v1874_v29  ;;  %v1881_v33 = vsub.f32 %v1859_v24, %v1871_v30  ;;  %v2146_v24 = vld [vmem:[%s3911_s15 + $0x10] sm:$0xff]  ;;  %v2236_v30 = vld [vmem:[%s3910_s18 + $0x18] sm:$0xff] }
 0x682   : > { %v3166_v27 = vpack.c.bf16 %v2147_v26, %v2146_v24  ;;  %v2235_v29 = vld [vmem:[%s3910_s18 + $0x10] sm:$0xff] }
 0x683   : > { %v1885_v34 = vmul.f32 1.442695, %v1882_v31  ;;  %v1883_v38 = vmul.f32 1.442695, %v1881_v33 }
 0x684   : > { %v3207_v39 = vpop.permute.xlu0 %3206  ;;  %v3212_v40 = vpop.permute.xlu1 %3211 }
 0x685   : > { %3225 = vpow2.f32 %v1885_v34  ;;  %v3209_v41 = vunpack.i.h.bf16 %v3207_v39  ;;  %v3208_v42 = vunpack.i.l.bf16 %v3207_v39  ;;  %v3214_v43 = vunpack.i.h.bf16 %v3212_v40  ;;  %v3777_v39 = vld [vmem:[#allocation4] sm:$0xff] }
 0x686   : > { %3227 = vpow2.f32 %v1883_v38  ;;  %v3213_v44 = vunpack.i.l.bf16 %v3212_v40  ;;  %v3174_v38 = vpack.c.bf16 %v2236_v30, %v2235_v29  ;;  %v3783_v40 = vld [vmem:[#allocation4 + $0x8] sm:$0xff] }
 0x687   : > { %v3146_v46 = vpack.c.bf16 %v3209_v41, %v3208_v42 }
 0x688   : > { %v3150_v45 = vpack.c.bf16 %v3214_v43, %v3213_v44  ;;  %v1922_v47 = vpop.permute.xlu1 %1921 }
 0x689   : > { %3147 = vmatprep.subr.bf16.mxu0 %v3146_v46 }
 0x68a   : > { %3149 = vmatpush3.bf16.msra.mxu0 %v3146_v46 }
 0x68b   : > { %3151 = vmatprep.subr.bf16.mxu0 %v3150_v45 }
 0x68e   : > { %3153 = vmatpush3.bf16.msra.mxu0 %v3150_v45 }
 0x68f   : > { %v3226_v48 = vpop.eup %3225  ;;  %3019 = vmatprep.subr.mxu0 %v1922_v47 }
 0x690   : > { %v3228_v49 = vpop.eup %3227  ;;  %v1888_v50 = vsel %vm1854_vm6, %v3226_v48, 0.0 }
 0x691   : > { %v1887_v51 = vsel %vm1853_vm7, %v3228_v49, 0.0  ;;  %v1900_v52 = vsel %vm1868_vm8, %v1888_v50, 0.0 }
 0x692   : > { %3021 = vmatprep.mubr.msk.f32.mxu0 %vm1868_vm8, %v1887_v51  ;;  %1901 = vadd.xlane.f32.xlu1 %v1900_v52  ;;  %v1897_v53 = vsel %vm1868_vm8, %v1887_v51, 0.0  ;;  %v2239_v51 = vsub.s32 5, %v3489_v35 }
 0x693   : > { %1898 = vadd.xlane.f32.xlu0 %v1897_v53  ;;  %3020 = vmatpush3.msra.mxu0 %v1922_v47 }
 0x694   : > { %3022 = vmatmul.mubr.msk.f32.vlgmr.msra.gmra.mrb[26].mxu0 %vm1868_vm8, %v1888_v50  ;;  %3163 = vmatprep.subr.bf16.mxu0 %v3162_v25  ;;  %v2240_v18 = vrot.slane %v3497_v37, %v2239_v51 }
 0x695   : > { %3165 = vmatpush3.bf16.msra.mxu0 %v3162_v25 }
 0x696   : > { %3167 = vmatprep.subr.bf16.mxu0 %v3166_v27 }
 0x699   : > { %3169 = vmatpush3.bf16.msra.mxu0 %v3166_v27 }
 0x69a   : > { %3178 = vmatprep.subr.bf16.mxu0 %v3262_v2 }
 0x71f   : > { %v1902_v61 = vpop.xlane.xlu1 %1901 }
 0x720   : > { %v1899_v62 = vpop.xlane.xlu0 %1898  ;;  %v1904_v63 = vmax.f32 %v1902_v61, 1e-30 }
 0x721   : > { %v1903_v0 = vmax.f32 %v1899_v62, 1e-30 }
 0x722   : > { %3229 = vrcp.f32 %v1904_v63 }
 0x723   : > { %3231 = vrcp.f32 %v1903_v0 }
 0x72c   : > { %v3230_v5 = vpop.eup %3229 }
 0x72d   : > { %v3232_v6 = vpop.eup %3231  ;;  %v2030_v8 = vmul.f32 %v3230_v5, %v3737_v1 }
 0x72e   : > { %v2029_v9 = vmul.f32 %v3232_v6, %v3740_v4 }
 0x72f   : > { %2038 = vperm.xlu1 %3216, %v2030_v8  }
 0x730   : > { %2033 = vperm.xlu0 %3215, %v2029_v9  }
 0x74f   : > { %1879 = vmax.xlane.f32.xlu0 %v1878_v16  ;;  %v2472_v16 = vld [vmem:[%s3913_s6] sm:$0xf] }
 0x753   : > { %1876 = vmax.xlane.f32.xlu1 %v1875_v21 }
 0x767   : > { %v3023_v22 = vpop.f32.mrb[26].mxu0 }
 0x768   : > { %v2006_v23 = vpop.f32.mrb[27].mxu0 }
 0x7ae   : > { %v2039_v28 = vpop.permute.xlu1 %2038 }
 0x7af   : > { %v2034_v31 = vpop.permute.xlu0 %2033  ;;  %v2042_v33 = vmul.f32 %v3023_v22, %v2039_v28 }
 0x7b0   : > { %v2041_v34 = vmul.f32 %v2034_v31, %v2006_v23 }
 0x7b2   : > { %3035 = vmatprep.mubr.msk.f32.mxu1 %vm794_vm1, %v2041_v34 }
 0x7b3   : > { %3036 = vmatmul.mubr.msk.f32.vlgmr.msra.gmra.mrb[32].mxu1 %vm794_vm1, %v2042_v33 }
 0x7b4   : > { %3173 = vmatpush3.bf16.msra.mxu1 %v3170_v12  ;;  %3057 = vmatprep.mubr.msk.f32.mxu1 %vm794_vm1, %v3777_v39 }
 0x7b5   : > { %3175 = vmatprep.subr.bf16.mxu1 %v3174_v38 }
 0x7b8   : > { %3177 = vmatpush3.bf16.msra.mxu1 %v3174_v38 }
 0x7b9   : > { %3181 = vmatprep.subr.bf16.mxu1 %v3262_v2 }
 0x7bb   : > { %3058 = vmatmul.mubr.msk.f32.vlgmr.msra.gmra.mrb[34].mxu1 %vm794_vm1, %v3783_v40 }
 0x7bc   : > { %3071 = vmatprep.mubr.msk.f32.mxu1 %vm3263_vm2, %v3264_v3 }
 0x7c1   : > { %3184 = vmatpush3.bf16.xpose.msk.msra.mxu1 %vm3682_vm5, %v3571_v32 }
 0x7dc   : > { %v1880_v41 = vpop.xlane.xlu0 %1879 }
 0x7dd   : > { %v1890_v42 = vsub.f32 %v1867_v15, %v1880_v41 }
 0x7df   : > { %v1893_v43 = vmul.f32 1.442695, %v1890_v42 }
 0x7e0   : > { %v1877_v44 = vpop.xlane.xlu1 %1876 }
 0x7e1   : > { %v1889_v46 = vsub.f32 %v1866_v19, %v1877_v44  ;;  %3233 = vpow2.f32 %v1893_v43 }
 0x7e3   : > { %v1891_v45 = vmul.f32 1.442695, %v1889_v46 }
 0x7e5   : > { %3235 = vpow2.f32 %v1891_v45 }
 0x7eb   : > { %v3234_v47 = vpop.eup %3233 }
 0x7ec   : > { %v1896_v49 = vsel %vm1854_vm6, %v3234_v47, 0.0 }
 0x7ed   : > { %v1908_v55 = vsel %vm1868_vm8, %v1896_v49, 0.0 }
 0x7ef   : > { %v3236_v2 = vpop.eup %3235 }
 0x7f0   : > { %v1895_v48 = vsel %vm1853_vm7, %v3236_v2, 0.0 }
 0x7f1   : > { %3024 = vmatprep.mubr.msk.f32.mxu0 %vm1868_vm8, %v1895_v48  ;;  %v1905_v23 = vsel %vm1868_vm8, %v1895_v48, 0.0 }
 0x7f2   : > { %3025 = vmatmul.mubr.msk.f32.gmra.mrb[28].mxu0 %vm1868_vm8, %v1896_v49 }
 0x886   : > { %v3037_v7 = vpop.f32.mrb[32].mxu1 }
 0x887   : > { %v2135_v50 = vpop.f32.mrb[33].mxu1 }
 0x888   : > { %3046 = vmatprep.mubr.msk.f32.mxu0 %vm794_vm1, %v2135_v50 }
 0x889   : > { %3047 = vmatmul.mubr.msk.f32.vlgmr.msra.gmra.mrb[30].mxu0 %vm794_vm1, %v3037_v7 }
 0x88a   : > { %3180 = vmatpush3.bf16.msra.mxu0 %v3571_v32  ;;  %3064 = vmatprep.mubr.msk.f32.mxu0 %vm3263_vm2, %v3264_v3  ;;  %v2398_v32 = vld [vmem:[%s3912_s19] sm:$0xf] }
 0x88d   : > { %3065 = vmatmul.mubr.msk.f32.vlgmr.msra.gmra.mrb[32].mxu0 %vm1175_vm4, %v2398_v32 }
 0x88e   : > { %v3059_v52 = vpop.f32.mrb[34].mxu1 }
 0x88f   : > { %v2319_v17 = vadd.f32 %v3059_v52, %v2240_v18  ;;  %v2313_v53 = vpop.f32.mrb[35].mxu1 }
 0x890   : > { %v2314_v54 = vadd.f32 %v2313_v53, %v2240_v18 }
 0x891   : > { %2340 = vrot.lane.b32.xlu0 %v2319_v17, %s3267_s26 }
 0x892   : > { %2338 = vrot.lane.b32.xlu1 %v2314_v54, %s3267_s26 }
 0x8b0   : > { %1909 = vadd.xlane.f32.xlu0 %v1908_v55 }
 0x8c5   : > { %v3813_v3 = vpop.f32.mrb[28].mxu0 }
 0x8c6   : > { %v3815_v56 = vpop.f32.mrb[29].mxu0 }
 0x903   : > { %v2341_v14 = vpop.permute.xlu0 %2340 }
 0x904   : > { %v2339_v12 = vpop.permute.xlu1 %2338 }
 0x93d   : > { %v1910_v28 = vpop.xlane.xlu0 %1909 }
 0x93e   : > { %v1912_v30 = vmax.f32 %v1910_v28, 1e-30 }
 0x95c   : > { %v3048_v59 = vpop.f32.mrb[30].mxu0 }
 0x95d   : > { %v2230_v60 = vadd.f32 %v3048_v59, %v2151_v58  ;;  %v2224_v61 = vpop.f32.mrb[31].mxu0 }
 0x95e   : > { %v2225_v62 = vadd.f32 %v2224_v61, %v2151_v58 }
 0x95f   : > { %v2323_v63 = vadd.f32 %v2319_v17, %v2230_v60 }
 0x960   : > { %v2322_v0 = vadd.f32 %v2314_v54, %v2225_v62  ;;  %v2468_v19 = vpop.f32.mrb[32].mxu0 }
 0x961   : > { %v2721_v5 = vmul.f32 -1.442695, %v2323_v63  ;;  %v2473_v21 = vmul.f32 %v2472_v16, %v2468_v19  ;;  %v3066_v22 = vpop.f32.mrb[33].mxu0 }
 0x962   : > { %v2720_v6 = vmul.f32 -1.442695, %v2322_v0 }
 0x963   : > { %3237 = vpow2.f32 %v2721_v5  ;;  %3072 = vmatmul.mubr.msk.f32.vlgmr.msra.gmra.mrb[36].mxu1 %vm794_vm1, %v2473_v21 }
 0x964   : > { %3239 = vpow2.f32 %v2720_v6 }
 0x96d   : > { %v3238_v8 = vpop.eup %3237 }
 0x96e   : > { %v3240_v9 = vpop.eup %3239  ;;  %v2331_v10 = vadd.f32 1.0, %v3238_v8 }
 0x96f   : > { %v2330_v11 = vadd.f32 1.0, %v3240_v9 }
 0x971   : > { %3241 = vrcp.f32 %v2330_v11 }
 0x972   : > { %3243 = vrcp.f32 %v2331_v10 }
 0x97b   : > { %v3242_v35 = vpop.eup %3241 }
 0x97c   : > { %v2344_v13 = vmul.f32 %v3242_v35, %v2339_v12  ;;  %v3244_v37 = vpop.eup %3243  ;;  %v2358_v43 = vsub.f32 1.0, %v3242_v35 }
 0x97d   : > { %v2345_v15 = vmul.f32 %v3244_v37, %v2341_v14  ;;  %v2359_v2 = vsub.f32 1.0, %v3244_v37 }
 0x97e   : > { %2348 = vrot.lane.b32.xlu1 %v2344_v13, %s3267_s26 }
 0x982   : > { %2350 = vrot.lane.b32.xlu1 %v2345_v15, %s3267_s26 }
 0x9a6   : > { %1906 = vadd.xlane.f32.xlu1 %v1905_v23 }
 0x9b7   : > { %2370 = vrot.lane.b32.xlu1 %v3777_v39, %s3269_s22 }
 0x9f0   : > { %v2349_v20 = vpop.permute.xlu1 %2348 }
 0x9f1   : > { %v2354_v36 = vadd.f32 %v2349_v20, %v2225_v62 }
 0x9f3   : > { %3245 = vtanh.f32 %v2354_v36 }
 0x9f4   : > { %v2351_v24 = vpop.permute.xlu1 %2350 }
 0x9f5   : > { %v2355_v25 = vadd.f32 %v2351_v24, %v2230_v60 }
 0x9f7   : > { %3247 = vtanh.f32 %v2355_v25 }
 0x9fd   : > { %v3246_v26 = vpop.eup %3245 }
 0x9fe   : > { %2362 = vrot.lane.b32.xlu1 %v3246_v26, %s3265_s3 }
 0xa01   : > { %v3248_v27 = vpop.eup %3247 }
 0xa02   : > { %2372 = vrot.lane.b32.xlu1 %v3783_v40, %s3269_s22  ;;  %2364 = vrot.lane.b32.xlu0 %v3248_v27, %s3265_s3 }
 0xa33   : > { %v1907_v29 = vpop.xlane.xlu1 %1906 }
 0xa34   : > { %v1911_v31 = vmax.f32 %v1907_v29, 1e-30 }
 0xa36   : > { %3249 = vrcp.f32 %v1911_v31  ;;  %v2549_v41 = vpop.f32.mrb[36].mxu1 }
 0xa37   : > { %3251 = vrcp.f32 %v1912_v30  ;;  %v2371_v42 = vpop.permute.xlu1 %2370  ;;  %v3073_v40 = vpop.f32.mrb[37].mxu1  ;;  %2554 = vst.msk [vmem:[%s3914_s30] sm:$0xf] %vm2553_vm9, %v2549_v41 }
 0xa38   : > { %v2376_v46 = vmul.f32 %v3242_v35, %v2371_v42 }
 0xa40   : > { %v3250_v33 = vpop.eup %3249 }
 0xa41   : > { %v2045_v34 = vmul.f32 %v3250_v33, %v3740_v4  ;;  %v3252_v38 = vpop.eup %3251 }
 0xa42   : > { %v2046_v39 = vmul.f32 %v3252_v38, %v3737_v1 }
 0xa43   : > { %2049 = vperm.xlu1 %3216, %v2045_v34  }
 0xa47   : > { %2054 = vperm.xlu1 %3216, %v2046_v39  }
 0xa70   : > { %v2363_v44 = vpop.permute.xlu1 %2362 }
 0xa71   : > { %v2368_v45 = vmul.f32 %v2363_v44, %v2358_v43 }
 0xa73   : > { %v2378_v47 = vadd.f32 %v2376_v46, %v2368_v45 }
 0xa74   : > { %v2365_v4 = vpop.permute.xlu0 %2364  ;;  %v2373_v48 = vpop.permute.xlu1 %2372 }
 0xa75   : > { %v2369_v49 = vmul.f32 %v2365_v4, %v2359_v2  ;;  %v2377_v7 = vmul.f32 %v3244_v37, %v2373_v48  ;;  %2386 = vrot.lane.b32.xlu0 %v2378_v47, %s3265_s3 }
 0xa77   : > { %v2379_v1 = vadd.f32 %v2377_v7, %v2369_v49 }
 0xa79   : > { %2388 = vrot.lane.b32.xlu1 %v2379_v1, %s3265_s3 }
 0xac2   : > { %v2050_v50 = vpop.permute.xlu1 %2049 }
 0xac3   : > { %v2057_v51 = vmul.f32 %v2050_v50, %v3815_v56 }
 0xac5   : > { %2382 = vst.msk [vmem:[#allocation3] sm:$0xff] %vm794_vm1, %v2057_v51  ;;  %2396 = vst.msk [vmem:[%s3915_s27] sm:$0xff] %vm794_vm1, %v2057_v51 }
 0xac6   : > { %v2055_v18 = vpop.permute.xlu1 %2054 }
 0xac7   : > { %v2058_v52 = vmul.f32 %v3813_v3, %v2055_v18 }
 0xac9   : > { %2383 = vst.msk [vmem:[#allocation3 + $0x8] sm:$0xff] %vm794_vm1, %v2058_v52  ;;  %2397 = vst.msk [vmem:[%s3915_s27 + $0x8] sm:$0xff] %vm794_vm1, %v2058_v52 }
 0xae7   : > { %v2387_v17 = vpop.permute.xlu0 %2386 }
 0xae8   : > { %2392 = vst.msk [vmem:[#allocation4] sm:$0xff] %vm794_vm1, %v2387_v17 }
 0xaeb   : > { %v2389_v53 = vpop.permute.xlu1 %2388 }
 0xaec   : > { %2393 = vst.msk [vmem:[#allocation4 + $0x8] sm:$0xff] %vm794_vm1, %v2389_v53 }
 0xaed PF: > { %s3916_s3 = sld [smem:[#allocation5_spill]] }
 0xaf3   : > { %s33_s3 = sadd.s32 1, %s3916_s3  }
 0xaf4   : > { %p30_p5 = scmp.ge.s32.totalorder %s33_s3, 5  }
 0xaf6   :  { %32 = sbr.rel (!%p30_p5) target bundleno = 15 (0xf), region = 161 }

</bundles_post_ra>
